<compile_context>
chip_gen: v7x
topology: tpu7x:2x2x1
jax: 0.10.0
libtpu: 0.0.40
codegen_flags: <defaults>
</compile_context>

<pallas_src>
import functools

import jax
import jax.numpy as jnp
from jax.experimental import pallas as pl
from jax.experimental.pallas import tpu as pltpu


def _convrnn_step_kernel(x_ref, wx_ref, wh_ref, rs_ref, af_ref, o_ref, h_scr,
                         *, S1, S2, CH):
    """One recurrent step for one batch sample.

    x_ref : (S1*S2, Cin)      input slice at time t (channels last)
    wx_ref: (Cin, CH)         x_2_h pointwise-conv weight
    wh_ref: (9, CH, CH)       w_h (1,3,3) conv weight, tap-major, (c_in, c_out)
    rs_ref: (1, CH)           L2NormLayer rescale
    af_ref: (1, CH)           L2NormLayer affine
    o_ref : (S1*S2, CH)       hidden state emitted for this (n, t)
    h_scr : (S1+2, S2+2, CH)  zero-padded hidden state, resident in VMEM across t
    """
    t = pl.program_id(1)
    P = S1 * S2

    @pl.when(t == 0)
    def _init():
        h_scr[...] = jnp.zeros_like(h_scr)

    # hidden-to-hidden (1,3,3) conv, padding (0,1,1): nine shifted channel
    # contractions on the MXU, f32 accumulation.
    y = jnp.zeros((P, CH), dtype=jnp.float32)
    for kh in range(3):
        for kw in range(3):
            patch = h_scr[pl.ds(kh, S1), pl.ds(kw, S2), :]          # (S1, S2, CH)
            y = y + jnp.dot(patch.reshape(P, CH), wh_ref[kh * 3 + kw],
                            preferred_element_type=jnp.float32)

    # L2NormLayer (ParseNet): x / clamp(sqrt(||x||_2), 1e-4) * rescale + affine,
    # with the L2 norm taken per sample over all channels & spatial positions.
    ssq = jnp.sum(y * y, keepdims=True)                             # (1, 1)
    denom = jnp.maximum(jnp.sqrt(jnp.sqrt(ssq)), 1e-4)              # clamp(sqrt(L2norm))
    z = y * (1.0 / denom) * rs_ref[...] + af_ref[...]

    # input-to-hidden (x_2_h_module = 1x1x1 conv) fused as a channel matmul.
    xh = jnp.dot(x_ref[...], wx_ref[...], preferred_element_type=jnp.float32)

    h_new = jnp.maximum(xh + z, 0.0)                                # ReLU

    o_ref[...] = h_new.astype(o_ref.dtype)
    # keep the recurrent state resident in VMEM (interior of the padded buffer)
    h_scr[pl.ds(1, S1), pl.ds(1, S2), :] = h_new.reshape(S1, S2, CH)


def conv_rnn_cell_3d(x, wx, wh, rescale, affine, *, reverse=False):
    """ConvRNNCell3d.forward (seq_dim=4) with a fused pointwise x_2_h projection.

    x       : (N, Cin, D, H, W) float32
    wx      : (Cin, CH)         x_2_h 1x1x1 conv weight
    wh      : (CH, CH, 3, 3)    w_h conv weight in torch (out, in, kh, kw) order
    rescale : (CH,)             L2NormLayer rescale (init 10.0)
    affine  : (CH,)             L2NormLayer affine  (init 0.0)
    returns : (N, CH, D, H, W)
    """
    N, Cin, D, H, W = x.shape
    CH = wx.shape[1]
    T, S1, S2 = W, H, D            # sequence runs along W; per-step spatial dims (H, D)
    P = S1 * S2

    # Wrapper-side layout plumbing: time-major, channels-last, flattened spatial.
    xt = jnp.transpose(x, (0, 4, 3, 2, 1)).astype(jnp.float32)     # (N, W, H, D, Cin)
    if reverse:                                                    # reversed recurrence
        xt = xt[:, ::-1]
    x_flat = xt.reshape(N, T, P, Cin)

    wh9 = jnp.transpose(wh, (2, 3, 1, 0)).reshape(9, CH, CH).astype(jnp.float32)
    rs2 = rescale.reshape(1, CH).astype(jnp.float32)
    af2 = affine.reshape(1, CH).astype(jnp.float32)

    kernel = functools.partial(_convrnn_step_kernel, S1=S1, S2=S2, CH=CH)

    out_flat = pl.pallas_call(
        kernel,
        out_shape=jax.ShapeDtypeStruct((N, T, P, CH), jnp.float32),
        grid_spec=pltpu.PrefetchScalarGridSpec(
            num_scalar_prefetch=0,
            grid=(N, T),
            in_specs=[
                pl.BlockSpec((None, None, P, Cin), lambda n, t: (n, t, 0, 0)),
                pl.BlockSpec((Cin, CH), lambda n, t: (0, 0)),
                pl.BlockSpec((9, CH, CH), lambda n, t: (0, 0, 0)),
                pl.BlockSpec((1, CH), lambda n, t: (0, 0)),
                pl.BlockSpec((1, CH), lambda n, t: (0, 0)),
            ],
            out_specs=pl.BlockSpec((None, None, P, CH), lambda n, t: (n, t, 0, 0)),
            scratch_shapes=[pltpu.VMEM((S1 + 2, S2 + 2, CH), jnp.float32)],
        ),
        compiler_params=pltpu.CompilerParams(
            dimension_semantics=("parallel", "arbitrary"),
            vmem_limit_bytes=32 * 1024 * 1024,
        ),
    )(x_flat, wx.astype(jnp.float32), wh9, rs2, af2)

    out = out_flat.reshape(N, T, S1, S2, CH)        # (N, W, H, D, CH)
    return jnp.transpose(out, (0, 4, 3, 2, 1))      # (N, CH, D, H, W)


def conv_rnn_cell_3d_reference(x, wx, wh, rescale, affine, *, reverse=False):
    """Pure-JAX reference mirroring the PyTorch forward (seq_dim=4, 'same', 'l2n', relu)."""
    N, Cin, D, H, W = x.shape
    CH = wx.shape[1]
    hp = jax.lax.Precision.HIGHEST
    xh = jnp.einsum("ncdhw,ck->nkdhw", x, wx, precision=hp)        # x_2_h pointwise conv
    xh = jnp.transpose(xh, (0, 1, 4, 3, 2))                        # (N, CH, W, H, D)
    h = jnp.zeros((N, CH, H, D), jnp.float32)
    steps = range(W - 1, -1, -1) if reverse else range(W)
    outs = []
    for t in steps:
        y = jax.lax.conv_general_dilated(
            h, wh, window_strides=(1, 1), padding=((1, 1), (1, 1)),
            dimension_numbers=("NCHW", "OIHW", "NCHW"), precision=hp)
        flat = y.reshape(N, -1)
        l2 = jnp.sqrt(jnp.sum(flat * flat, axis=1, keepdims=True))
        denom = jnp.maximum(jnp.sqrt(l2), 1e-4)
        z = (flat / denom).reshape(y.shape) * rescale.reshape(1, CH, 1, 1) \
            + affine.reshape(1, CH, 1, 1)
        h = jax.nn.relu(xh[:, :, t] + z)
        outs.append(h)
    o = jnp.stack(outs, axis=2)                                    # (N, CH, W, H, D)
    return jnp.transpose(o, (0, 1, 4, 3, 2))                       # (N, CH, D, H, W)


if __name__ == "__main__":
    key = jax.random.PRNGKey(0)
    kx, kwx, kwh = jax.random.split(key, 3)

    # x: (N, in_ch, D, H, W); seq_dim=4 -> recurrence over W (T=8 steps)
    N, Cin, D, H, W = 2, 4, 16, 16, 8
    CH = 32                                                        # hidden_ch

    x = jax.random.normal(kx, (N, Cin, D, H, W), dtype=jnp.float32)
    wx = 0.5 * jax.random.normal(kwx, (Cin, CH), dtype=jnp.float32)
    wh = 0.1 * jax.random.normal(kwh, (CH, CH, 3, 3), dtype=jnp.float32)
    rescale = jnp.full((CH,), 10.0, dtype=jnp.float32)             # L2NormLayer defaults
    affine = jnp.zeros((CH,), dtype=jnp.float32)

    y = conv_rnn_cell_3d(x, wx, wh, rescale, affine)
    jax.block_until_ready(y)

    assert y.shape == (N, CH, D, H, W) and y.dtype == jnp.float32

    y_ref = conv_rnn_cell_3d_reference(x, wx, wh, rescale, affine)
    rel_err = jnp.linalg.norm((y - y_ref).ravel()) / (jnp.linalg.norm(y_ref.ravel()) + 1e-8)
    assert float(rel_err) < 3e-2, f"mismatch vs reference: rel_err={float(rel_err)}"
    print("KERNEL_OK")
</pallas_src>

<mosaic_0001>
module attributes {stable_mosaic.version = 11 : i64} {
  func.func @_convrnn_step_kernel(%arg0: i32, %arg1: i32, %arg2: memref<1x1x256x4xf32, #tpu.memory_space<vmem>>, %arg3: memref<4x32xf32, #tpu.memory_space<vmem>>, %arg4: memref<9x32x32xf32, #tpu.memory_space<vmem>>, %arg5: memref<1x32xf32, #tpu.memory_space<vmem>>, %arg6: memref<1x32xf32, #tpu.memory_space<vmem>>, %arg7: memref<1x1x256x32xf32, #tpu.memory_space<vmem>>, %arg8: memref<18x18x32xf32, #tpu.memory_space<vmem>>) attributes {dimension_semantics = [#tpu.dimension_semantics<parallel>, #tpu.dimension_semantics<arbitrary>], iteration_bounds = array<i64: 2, 8>, scalar_prefetch = 0 : i64, scratch_operands = 1 : i64, tpu.core_type = #tpu.core_type<tc>, window_params = [{transform_indices = @transform_0, window_bounds = array<i64: 1, 1, 256, 4>}, {pipeline_mode = #tpu.pipeline_mode<synchronous>, transform_indices = @transform_1, window_bounds = array<i64: 4, 32>}, {pipeline_mode = #tpu.pipeline_mode<synchronous>, transform_indices = @transform_2, window_bounds = array<i64: 9, 32, 32>}, {pipeline_mode = #tpu.pipeline_mode<synchronous>, transform_indices = @transform_3, window_bounds = array<i64: 1, 32>}, {pipeline_mode = #tpu.pipeline_mode<synchronous>, transform_indices = @transform_4, window_bounds = array<i64: 1, 32>}, {transform_indices = @transform_5, window_bounds = array<i64: 1, 1, 256, 32>}]} {
    %c0_i32 = arith.constant 0 : i32
    %0 = arith.cmpi eq, %arg1, %c0_i32 : i32
    %1 = arith.extui %0 : i1 to i32
    %c0_i32_0 = arith.constant 0 : i32
    %2 = arith.cmpi ne, %1, %c0_i32_0 : i32
    scf.if %2 {
      %cst_77 = arith.constant 0.000000e+00 : f32
      %90 = vector.broadcast %cst_77 : f32 to vector<18x18x32xf32>
      %c0_78 = arith.constant 0 : index
      %c0_79 = arith.constant 0 : index
      %c0_80 = arith.constant 0 : index
      %91 = vector.load %arg8[%c0_78, %c0_79, %c0_80] : memref<18x18x32xf32, #tpu.memory_space<vmem>>, vector<18x18x32xf32>
      tpu.vector_store %arg8[%c0_78, %c0_79, %c0_80], %90 {strides = array<i32>} : memref<18x18x32xf32, #tpu.memory_space<vmem>>, vector<18x18x32xf32>,
    } else {
    }
    %cst = arith.constant 0.000000e+00 : f32
    %3 = vector.broadcast %cst : f32 to vector<256x32xf32>
    %c0 = arith.constant 0 : index
    %c0_1 = arith.constant 0 : index
    %c0_2 = arith.constant 0 : index
    %4 = vector.load %arg8[%c0, %c0_1, %c0_2] : memref<18x18x32xf32, #tpu.memory_space<vmem>>, vector<16x16x32xf32>
    %5 = vector.shape_cast %4 : vector<16x16x32xf32> to vector<256x32xf32>
    %c0_3 = arith.constant 0 : index
    %c0_4 = arith.constant 0 : index
    %c0_5 = arith.constant 0 : index
    %6 = vector.load %arg4[%c0_3, %c0_4, %c0_5] : memref<9x32x32xf32, #tpu.memory_space<vmem>>, vector<1x32x32xf32>
    %7 = vector.shape_cast %6 : vector<1x32x32xf32> to vector<32x32xf32>
    %cst_6 = arith.constant dense<0.000000e+00> : vector<256x32xf32>
    %8 = tpu.matmul %5, %7, %cst_6 {dimension_numbers = #tpu.dot_dimension_numbers<[1], [0], [0], [1], [0, 0, 1, 1], [], []>} : vector<256x32xf32>, vector<32x32xf32>, vector<256x32xf32> -> vector<256x32xf32>
    %9 = arith.addf %3, %8 : vector<256x32xf32>
    %c0_7 = arith.constant 0 : index
    %c1 = arith.constant 1 : index
    %c0_8 = arith.constant 0 : index
    %10 = vector.load %arg8[%c0_7, %c1, %c0_8] : memref<18x18x32xf32, #tpu.memory_space<vmem>>, vector<16x16x32xf32>
    %11 = vector.shape_cast %10 : vector<16x16x32xf32> to vector<256x32xf32>
    %c1_9 = arith.constant 1 : index
    %c0_10 = arith.constant 0 : index
    %c0_11 = arith.constant 0 : index
    %12 = vector.load %arg4[%c1_9, %c0_10, %c0_11] : memref<9x32x32xf32, #tpu.memory_space<vmem>>, vector<1x32x32xf32>
    %13 = vector.shape_cast %12 : vector<1x32x32xf32> to vector<32x32xf32>
    %cst_12 = arith.constant dense<0.000000e+00> : vector<256x32xf32>
    %14 = tpu.matmul %11, %13, %cst_12 {dimension_numbers = #tpu.dot_dimension_numbers<[1], [0], [0], [1], [0, 0, 1, 1], [], []>} : vector<256x32xf32>, vector<32x32xf32>, vector<256x32xf32> -> vector<256x32xf32>
    %15 = arith.addf %9, %14 : vector<256x32xf32>
    %c0_13 = arith.constant 0 : index
    %c2 = arith.constant 2 : index
    %c0_14 = arith.constant 0 : index
    %16 = vector.load %arg8[%c0_13, %c2, %c0_14] : memref<18x18x32xf32, #tpu.memory_space<vmem>>, vector<16x16x32xf32>
    %17 = vector.shape_cast %16 : vector<16x16x32xf32> to vector<256x32xf32>
    %c2_15 = arith.constant 2 : index
    %c0_16 = arith.constant 0 : index
    %c0_17 = arith.constant 0 : index
    %18 = vector.load %arg4[%c2_15, %c0_16, %c0_17] : memref<9x32x32xf32, #tpu.memory_space<vmem>>, vector<1x32x32xf32>
    %19 = vector.shape_cast %18 : vector<1x32x32xf32> to vector<32x32xf32>
    %cst_18 = arith.constant dense<0.000000e+00> : vector<256x32xf32>
    %20 = tpu.matmul %17, %19, %cst_18 {dimension_numbers = #tpu.dot_dimension_numbers<[1], [0], [0], [1], [0, 0, 1, 1], [], []>} : vector<256x32xf32>, vector<32x32xf32>, vector<256x32xf32> -> vector<256x32xf32>
    %21 = arith.addf %15, %20 : vector<256x32xf32>
    %c1_19 = arith.constant 1 : index
    %c0_20 = arith.constant 0 : index
    %c0_21 = arith.constant 0 : index
    %22 = vector.load %arg8[%c1_19, %c0_20, %c0_21] : memref<18x18x32xf32, #tpu.memory_space<vmem>>, vector<16x16x32xf32>
    %23 = vector.shape_cast %22 : vector<16x16x32xf32> to vector<256x32xf32>
    %c3 = arith.constant 3 : index
    %c0_22 = arith.constant 0 : index
    %c0_23 = arith.constant 0 : index
    %24 = vector.load %arg4[%c3, %c0_22, %c0_23] : memref<9x32x32xf32, #tpu.memory_space<vmem>>, vector<1x32x32xf32>
    %25 = vector.shape_cast %24 : vector<1x32x32xf32> to vector<32x32xf32>
    %cst_24 = arith.constant dense<0.000000e+00> : vector<256x32xf32>
    %26 = tpu.matmul %23, %25, %cst_24 {dimension_numbers = #tpu.dot_dimension_numbers<[1], [0], [0], [1], [0, 0, 1, 1], [], []>} : vector<256x32xf32>, vector<32x32xf32>, vector<256x32xf32> -> vector<256x32xf32>
    %27 = arith.addf %21, %26 : vector<256x32xf32>
    %c1_25 = arith.constant 1 : index
    %c1_26 = arith.constant 1 : index
    %c0_27 = arith.constant 0 : index
    %28 = vector.load %arg8[%c1_25, %c1_26, %c0_27] : memref<18x18x32xf32, #tpu.memory_space<vmem>>, vector<16x16x32xf32>
    %29 = vector.shape_cast %28 : vector<16x16x32xf32> to vector<256x32xf32>
    %c4 = arith.constant 4 : index
    %c0_28 = arith.constant 0 : index
    %c0_29 = arith.constant 0 : index
    %30 = vector.load %arg4[%c4, %c0_28, %c0_29] : memref<9x32x32xf32, #tpu.memory_space<vmem>>, vector<1x32x32xf32>
    %31 = vector.shape_cast %30 : vector<1x32x32xf32> to vector<32x32xf32>
    %cst_30 = arith.constant dense<0.000000e+00> : vector<256x32xf32>
    %32 = tpu.matmul %29, %31, %cst_30 {dimension_numbers = #tpu.dot_dimension_numbers<[1], [0], [0], [1], [0, 0, 1, 1], [], []>} : vector<256x32xf32>, vector<32x32xf32>, vector<256x32xf32> -> vector<256x32xf32>
    %33 = arith.addf %27, %32 : vector<256x32xf32>
    %c1_31 = arith.constant 1 : index
    %c2_32 = arith.constant 2 : index
    %c0_33 = arith.constant 0 : index
    %34 = vector.load %arg8[%c1_31, %c2_32, %c0_33] : memref<18x18x32xf32, #tpu.memory_space<vmem>>, vector<16x16x32xf32>
    %35 = vector.shape_cast %34 : vector<16x16x32xf32> to vector<256x32xf32>
    %c5 = arith.constant 5 : index
    %c0_34 = arith.constant 0 : index
    %c0_35 = arith.constant 0 : index
    %36 = vector.load %arg4[%c5, %c0_34, %c0_35] : memref<9x32x32xf32, #tpu.memory_space<vmem>>, vector<1x32x32xf32>
    %37 = vector.shape_cast %36 : vector<1x32x32xf32> to vector<32x32xf32>
    %cst_36 = arith.constant dense<0.000000e+00> : vector<256x32xf32>
    %38 = tpu.matmul %35, %37, %cst_36 {dimension_numbers = #tpu.dot_dimension_numbers<[1], [0], [0], [1], [0, 0, 1, 1], [], []>} : vector<256x32xf32>, vector<32x32xf32>, vector<256x32xf32> -> vector<256x32xf32>
    %39 = arith.addf %33, %38 : vector<256x32xf32>
    %c2_37 = arith.constant 2 : index
    %c0_38 = arith.constant 0 : index
    %c0_39 = arith.constant 0 : index
    %40 = vector.load %arg8[%c2_37, %c0_38, %c0_39] : memref<18x18x32xf32, #tpu.memory_space<vmem>>, vector<16x16x32xf32>
    %41 = vector.shape_cast %40 : vector<16x16x32xf32> to vector<256x32xf32>
    %c6 = arith.constant 6 : index
    %c0_40 = arith.constant 0 : index
    %c0_41 = arith.constant 0 : index
    %42 = vector.load %arg4[%c6, %c0_40, %c0_41] : memref<9x32x32xf32, #tpu.memory_space<vmem>>, vector<1x32x32xf32>
    %43 = vector.shape_cast %42 : vector<1x32x32xf32> to vector<32x32xf32>
    %cst_42 = arith.constant dense<0.000000e+00> : vector<256x32xf32>
    %44 = tpu.matmul %41, %43, %cst_42 {dimension_numbers = #tpu.dot_dimension_numbers<[1], [0], [0], [1], [0, 0, 1, 1], [], []>} : vector<256x32xf32>, vector<32x32xf32>, vector<256x32xf32> -> vector<256x32xf32>
    %45 = arith.addf %39, %44 : vector<256x32xf32>
    %c2_43 = arith.constant 2 : index
    %c1_44 = arith.constant 1 : index
    %c0_45 = arith.constant 0 : index
    %46 = vector.load %arg8[%c2_43, %c1_44, %c0_45] : memref<18x18x32xf32, #tpu.memory_space<vmem>>, vector<16x16x32xf32>
    %47 = vector.shape_cast %46 : vector<16x16x32xf32> to vector<256x32xf32>
    %c7 = arith.constant 7 : index
    %c0_46 = arith.constant 0 : index
    %c0_47 = arith.constant 0 : index
    %48 = vector.load %arg4[%c7, %c0_46, %c0_47] : memref<9x32x32xf32, #tpu.memory_space<vmem>>, vector<1x32x32xf32>
    %49 = vector.shape_cast %48 : vector<1x32x32xf32> to vector<32x32xf32>
    %cst_48 = arith.constant dense<0.000000e+00> : vector<256x32xf32>
    %50 = tpu.matmul %47, %49, %cst_48 {dimension_numbers = #tpu.dot_dimension_numbers<[1], [0], [0], [1], [0, 0, 1, 1], [], []>} : vector<256x32xf32>, vector<32x32xf32>, vector<256x32xf32> -> vector<256x32xf32>
    %51 = arith.addf %45, %50 : vector<256x32xf32>
    %c2_49 = arith.constant 2 : index
    %c2_50 = arith.constant 2 : index
    %c0_51 = arith.constant 0 : index
    %52 = vector.load %arg8[%c2_49, %c2_50, %c0_51] : memref<18x18x32xf32, #tpu.memory_space<vmem>>, vector<16x16x32xf32>
    %53 = vector.shape_cast %52 : vector<16x16x32xf32> to vector<256x32xf32>
    %c8 = arith.constant 8 : index
    %c0_52 = arith.constant 0 : index
    %c0_53 = arith.constant 0 : index
    %54 = vector.load %arg4[%c8, %c0_52, %c0_53] : memref<9x32x32xf32, #tpu.memory_space<vmem>>, vector<1x32x32xf32>
    %55 = vector.shape_cast %54 : vector<1x32x32xf32> to vector<32x32xf32>
    %cst_54 = arith.constant dense<0.000000e+00> : vector<256x32xf32>
    %56 = tpu.matmul %53, %55, %cst_54 {dimension_numbers = #tpu.dot_dimension_numbers<[1], [0], [0], [1], [0, 0, 1, 1], [], []>} : vector<256x32xf32>, vector<32x32xf32>, vector<256x32xf32> -> vector<256x32xf32>
    %57 = arith.addf %51, %56 : vector<256x32xf32>
    %58 = arith.mulf %57, %57 : vector<256x32xf32>
    %59 = vector.shape_cast %58 : vector<256x32xf32> to vector<1x256x32xf32>
    %cst_55 = arith.constant dense<0.000000e+00> : vector<1xf32>
    %60 = vector.multi_reduction <add>, %59, %cst_55 [1, 2] : vector<1x256x32xf32> to vector<1xf32>
    %61 = vector.shape_cast %60 : vector<1xf32> to vector<1x1x1xf32>
    %62 = vector.extract %61[0, 0, 0] : f32 from vector<1x1x1xf32>
    %63 = vector.broadcast %62 : f32 to vector<1x1xf32>
    %64 = math.sqrt %63 : vector<1x1xf32>
    %65 = math.sqrt %64 : vector<1x1xf32>
    %cst_56 = arith.constant 9.99999974E-5 : f32
    %66 = vector.broadcast %cst_56 : f32 to vector<1x1xf32>
    %67 = arith.maximumf %65, %66 : vector<1x1xf32>
    %cst_57 = arith.constant 1.000000e+00 : f32
    %68 = vector.broadcast %cst_57 : f32 to vector<1x1xf32>
    %69 = arith.divf %68, %67 : vector<1x1xf32>
    %70 = vector.broadcast %69 : vector<1x1xf32> to vector<256x32xf32>
    %71 = arith.mulf %57, %70 : vector<256x32xf32>
    %c0_58 = arith.constant 0 : index
    %c0_59 = arith.constant 0 : index
    %72 = vector.load %arg5[%c0_58, %c0_59] : memref<1x32xf32, #tpu.memory_space<vmem>>, vector<1x32xf32>
    %73 = vector.broadcast %72 : vector<1x32xf32> to vector<256x32xf32>
    %74 = arith.mulf %71, %73 : vector<256x32xf32>
    %c0_60 = arith.constant 0 : index
    %c0_61 = arith.constant 0 : index
    %75 = vector.load %arg6[%c0_60, %c0_61] : memref<1x32xf32, #tpu.memory_space<vmem>>, vector<1x32xf32>
    %76 = vector.broadcast %75 : vector<1x32xf32> to vector<256x32xf32>
    %77 = arith.addf %74, %76 : vector<256x32xf32>
    %c0_62 = arith.constant 0 : index
    %c0_63 = arith.constant 0 : index
    %c0_64 = arith.constant 0 : index
    %c0_65 = arith.constant 0 : index
    %78 = vector.load %arg2[%c0_62, %c0_63, %c0_64, %c0_65] : memref<1x1x256x4xf32, #tpu.memory_space<vmem>>, vector<1x1x256x4xf32>
    %79 = vector.shape_cast %78 : vector<1x1x256x4xf32> to vector<256x4xf32>
    %c0_66 = arith.constant 0 : index
    %c0_67 = arith.constant 0 : index
    %80 = vector.load %arg3[%c0_66, %c0_67] : memref<4x32xf32, #tpu.memory_space<vmem>>, vector<4x32xf32>
    %cst_68 = arith.constant dense<0.000000e+00> : vector<256x32xf32>
    %81 = tpu.matmul %79, %80, %cst_68 {dimension_numbers = #tpu.dot_dimension_numbers<[1], [0], [0], [1], [0, 0, 1, 1], [], []>} : vector<256x4xf32>, vector<4x32xf32>, vector<256x32xf32> -> vector<256x32xf32>
    %82 = arith.addf %81, %77 : vector<256x32xf32>
    %cst_69 = arith.constant 0.000000e+00 : f32
    %83 = vector.broadcast %cst_69 : f32 to vector<256x32xf32>
    %84 = arith.maximumf %82, %83 : vector<256x32xf32>
    %c0_70 = arith.constant 0 : index
    %c0_71 = arith.constant 0 : index
    %c0_72 = arith.constant 0 : index
    %c0_73 = arith.constant 0 : index
    %85 = vector.load %arg7[%c0_70, %c0_71, %c0_72, %c0_73] : memref<1x1x256x32xf32, #tpu.memory_space<vmem>>, vector<1x1x256x32xf32>
    %86 = vector.shape_cast %85 : vector<1x1x256x32xf32> to vector<256x32xf32>
    %87 = vector.shape_cast %84 : vector<256x32xf32> to vector<1x1x256x32xf32>
    tpu.vector_store %arg7[%c0_70, %c0_71, %c0_72, %c0_73], %87 {strides = array<i32>} : memref<1x1x256x32xf32, #tpu.memory_space<vmem>>, vector<1x1x256x32xf32>,
    %88 = vector.shape_cast %84 : vector<256x32xf32> to vector<16x16x32xf32>
    %c1_74 = arith.constant 1 : index
    %c1_75 = arith.constant 1 : index
    %c0_76 = arith.constant 0 : index
    %89 = vector.load %arg8[%c1_74, %c1_75, %c0_76] : memref<18x18x32xf32, #tpu.memory_space<vmem>>, vector<16x16x32xf32>
    tpu.vector_store %arg8[%c1_74, %c1_75, %c0_76], %88 {strides = array<i32>} : memref<18x18x32xf32, #tpu.memory_space<vmem>>, vector<16x16x32xf32>,
    return
  }
  func.func @transform_0(%arg0: i32, %arg1: i32) -> (i32, i32, i32, i32) {
    %c0_i32 = arith.constant 0 : i32
    %c0_i32_0 = arith.constant 0 : i32
    %c0_i32_1 = arith.constant 0 : i32
    return %arg0, %arg1, %c0_i32, %c0_i32_0 : i32, i32, i32, i32
  }
  func.func @transform_1(%arg0: i32, %arg1: i32) -> (i32, i32) {
    %c0_i32 = arith.constant 0 : i32
    %c0_i32_0 = arith.constant 0 : i32
    %c0_i32_1 = arith.constant 0 : i32
    return %c0_i32, %c0_i32_0 : i32, i32
  }
  func.func @transform_2(%arg0: i32, %arg1: i32) -> (i32, i32, i32) {
    %c0_i32 = arith.constant 0 : i32
    %c0_i32_0 = arith.constant 0 : i32
    %c0_i32_1 = arith.constant 0 : i32
    %c0_i32_2 = arith.constant 0 : i32
    return %c0_i32, %c0_i32_0, %c0_i32_1 : i32, i32, i32
  }
  func.func @transform_3(%arg0: i32, %arg1: i32) -> (i32, i32) {
    %c0_i32 = arith.constant 0 : i32
    %c0_i32_0 = arith.constant 0 : i32
    %c0_i32_1 = arith.constant 0 : i32
    return %c0_i32, %c0_i32_0 : i32, i32
  }
  func.func @transform_4(%arg0: i32, %arg1: i32) -> (i32, i32) {
    %c0_i32 = arith.constant 0 : i32
    %c0_i32_0 = arith.constant 0 : i32
    %c0_i32_1 = arith.constant 0 : i32
    return %c0_i32, %c0_i32_0 : i32, i32
  }
  func.func @transform_5(%arg0: i32, %arg1: i32) -> (i32, i32, i32, i32) {
    %c0_i32 = arith.constant 0 : i32
    %c0_i32_0 = arith.constant 0 : i32
    %c0_i32_1 = arith.constant 0 : i32
    return %arg0, %arg1, %c0_i32, %c0_i32_0 : i32, i32, i32, i32
  }
}

</mosaic_0001>

<bundles_post_ra>
// kernel: tpu_custom_call.1
= control target key start
LH: loop header
LB: loop body
LE: loop exit
PB: predicated region body
PF: predicated region fallthrough
CT: control target
= control target key end

     0   :  { %s6279_s18 = smov 0   ;;  %s6281_s19 = smov 0   ;;  %s7919_s0 = inlined_call_operand.vmem [shape: f32[2,8,256,4], index: 0, kind: input, shape index: {}]   ;;  %s7920_s1 = inlined_call_operand.vmem [shape: f32[4,32], index: 1, kind: input, shape index: {}]   ;;  %s7921_s2 = inlined_call_operand.vmem [shape: f32[9,32,32], index: 2, kind: input, shape index: {}]   ;;  %s7922_s3 = inlined_call_operand.vmem [shape: f32[1,32], index: 3, kind: input, shape index: {}]   ;;  %s7923_s4 = inlined_call_operand.vmem [shape: f32[1,32], index: 4, kind: input, shape index: {}]   ;;  %s7924_s5 = inlined_call_operand.vmem [shape: f32[2,8,256,32], index: 5, kind: output, shape index: {}]  }
   0x1   :  { %s6283_s20 = smov 0   ;;  %s6285_s21 = smov 0  }
   0x2   :  { %s6287_s22 = smov 0  }
   0x3 LB: > { %s24_s23 = sadd.s32 1, %s6238_s20  ;;  %s27_s24 = sadd.s32 1, %s6242_s21  ;;  %s6246_s22 = sphi %s6287_s22, %s15_s22   ;;  %s6242_s21 = sphi %s6285_s21, %s8086_s21   ;;  %s6238_s20 = sphi %s6283_s20, %s8085_s20   ;;  %s6234_s19 = sphi %s6281_s19, %s8084_s19   ;;  %s6230_s18 = sphi %s6279_s18, %s8083_s18  }
   0x4   : > { %p25_p0 = scmp.ge.s32.totalorder %s24_s23, 8  ;;  %p4555_p1 = scmp.ge.s32.totalorder %s6246_s22, 1 }
   0x5   : > { %p207_p2 = scmp.lt.s32.totalorder %s6246_s22, 17 }
   0x6   : > { %s8088_s23 = smov (%p25_p0, %s24_s23), 0  ;;  %s8090_s24 = smov (!%p25_p0, %s27_s24), %s6242_s21 }
   0x7   : > { %p208_p3 = pnand %p4555_p1, %p207_p2  ;;  %p29_p4 = scmp.ge.s32.totalorder %s8090_s24, 2 }
   0x9   : > { %s8092_s24 = smov (%p29_p4, %s8090_s24), 0  ;;  %211 = sbr.rel (%p208_p3) target bundleno = 899 (0x383), region = 40 }
  0x10   : > { %p243_p5 = scmp.lt.s32.totalorder %s6234_s19, 1  ;;  %p245_p6 = scmp.lt.s32.totalorder %s6230_s18, 7 }
  0x11   : > { %p4562_p7 = scmp.ne.s32.totalorder %s6230_s18, 0 }
  0x12   : > { %s8094_s19 = smov (!%p243_p5, %s6234_s19), 1  ;;  %vm265_vm0 = vcmask (!%p4562_p7), 261120   ;;  %vm268_vm1 = vcmask (!%p4562_p7), 254976   ;;  %v6248_v0 = vmov (!%p4562_p7), 0.0  }
  0x13   : > { %s246_s25 = scalar_select %p245_p6, %s6230_s18, 7 }
  0x14   : > { %s4557_s26 = sshll.u32 %s8094_s19, 8  ;;  %264 = sbr.rel (%p4562_p7) target bundleno = 47 (0x2f), region = 44  ;;  %266 = vst.msk [vmem:[#allocation2] sm:$0xff] (!%p4562_p7), %vm265_vm0, %v6248_v0  ;;  %267 = vst.msk [vmem:[#allocation2 + $0x8] sm:$0xff] (!%p4562_p7), %vm265_vm0, %v6248_v0 }
  0x15   : > { %s4556_s27 = sshll.u32 %s246_s25, 5  ;;  %270 = vst.msk [vmem:[#allocation2 + $0x18] sm:$0xff] (!%p4562_p7), %vm265_vm0, %v6248_v0  ;;  %271 = vst.msk [vmem:[#allocation2 + $0x20] sm:$0xff] (!%p4562_p7), %vm265_vm0, %v6248_v0 }
  0x16   : > { %s249_s28 = sadd.s32 %s4557_s26, %s4556_s27  ;;  %273 = vst.msk [vmem:[#allocation2 + $0x30] sm:$0xff] (!%p4562_p7), %vm265_vm0, %v6248_v0  ;;  %274 = vst.msk [vmem:[#allocation2 + $0x38] sm:$0xff] (!%p4562_p7), %vm265_vm0, %v6248_v0 }
  0x17   : > { %s4558_s29 = sshll.u32 %s249_s28, 3  ;;  %276 = vst.msk [vmem:[#allocation2 + $0x48] sm:$0xff] (!%p4562_p7), %vm265_vm0, %v6248_v0  ;;  %277 = vst.msk [vmem:[#allocation2 + $0x50] sm:$0xff] (!%p4562_p7), %vm265_vm0, %v6248_v0 }
  0x18   : > { %s6312_s7 = scalar_lea.vmem %s7919_s0, %s4558_s29  ;;  %s6317_s10 = scalar_lea.vmem %s7924_s5, %s4558_s29  ;;  %279 = vst.msk [vmem:[#allocation2 + $0x60] sm:$0xff] (!%p4562_p7), %vm265_vm0, %v6248_v0  ;;  %280 = vst.msk [vmem:[#allocation2 + $0x68] sm:$0xff] (!%p4562_p7), %vm265_vm0, %v6248_v0 }
  0x19   : > { %282 = vst.msk [vmem:[#allocation2 + $0x78] sm:$0xff] (!%p4562_p7), %vm265_vm0, %v6248_v0  ;;  %283 = vst.msk [vmem:[#allocation2 + $0x80] sm:$0xff] (!%p4562_p7), %vm265_vm0, %v6248_v0 }
  0x1a   : > { %285 = vst.msk [vmem:[#allocation2 + $0x90] sm:$0xff] (!%p4562_p7), %vm265_vm0, %v6248_v0  ;;  %286 = vst.msk [vmem:[#allocation2 + $0x98] sm:$0xff] (!%p4562_p7), %vm265_vm0, %v6248_v0 }
  0x1b   : > { %288 = vst.msk [vmem:[#allocation2 + $0xa8] sm:$0xff] %vm265_vm0, %v6248_v0  ;;  %289 = vst.msk [vmem:[#allocation2 + $0xb0] sm:$0xff] %vm265_vm0, %v6248_v0 }
  0x1c   : > { %291 = vst.msk [vmem:[#allocation2 + $0xc0] sm:$0xff] %vm265_vm0, %v6248_v0  ;;  %292 = vst.msk [vmem:[#allocation2 + $0xc8] sm:$0xff] %vm265_vm0, %v6248_v0 }
  0x1d   : > { %294 = vst.msk [vmem:[#allocation2 + $0xd8] sm:$0xff] %vm265_vm0, %v6248_v0  ;;  %295 = vst.msk [vmem:[#allocation2 + $0xe0] sm:$0xff] %vm265_vm0, %v6248_v0 }
  0x1e   : > { %297 = vst.msk [vmem:[#allocation2 + $0xf0] sm:$0xff] %vm265_vm0, %v6248_v0  ;;  %298 = vst.msk [vmem:[#allocation2 + $0xf8] sm:$0xff] %vm265_vm0, %v6248_v0 }
  0x1f   : > { %300 = vst.msk [vmem:[#allocation2 + $0x108] sm:$0xff] %vm265_vm0, %v6248_v0  ;;  %301 = vst.msk [vmem:[#allocation2 + $0x110] sm:$0xff] %vm265_vm0, %v6248_v0 }
  0x20   : > { %303 = vst.msk [vmem:[#allocation2 + $0x120] sm:$0xff] %vm265_vm0, %v6248_v0  ;;  %304 = vst.msk [vmem:[#allocation2 + $0x128] sm:$0xff] %vm265_vm0, %v6248_v0 }
  0x21   : > { %306 = vst.msk [vmem:[#allocation2 + $0x138] sm:$0xff] %vm265_vm0, %v6248_v0  ;;  %307 = vst.msk [vmem:[#allocation2 + $0x140] sm:$0xff] %vm265_vm0, %v6248_v0 }
  0x22   : > { %309 = vst.msk [vmem:[#allocation2 + $0x150] sm:$0xff] %vm265_vm0, %v6248_v0  ;;  %310 = vst.msk [vmem:[#allocation2 + $0x158] sm:$0xff] %vm265_vm0, %v6248_v0 }
  0x23   : > { %312 = vst.msk [vmem:[#allocation2 + $0x168] sm:$0xff] %vm265_vm0, %v6248_v0  ;;  %313 = vst.msk [vmem:[#allocation2 + $0x170] sm:$0xff] %vm265_vm0, %v6248_v0 }
  0x24   : > { %315 = vst.msk [vmem:[#allocation2 + $0x180] sm:$0xff] %vm265_vm0, %v6248_v0  ;;  %316 = vst.msk [vmem:[#allocation2 + $0x188] sm:$0xff] %vm265_vm0, %v6248_v0 }
  0x25   : > { %318 = vst.msk [vmem:[#allocation2 + $0x198] sm:$0xff] %vm265_vm0, %v6248_v0  ;;  %319 = vst.msk [vmem:[#allocation2 + $0x1a0] sm:$0xff] %vm265_vm0, %v6248_v0 }
  0x26   : > { %269 = vst.msk [vmem:[#allocation2 + $0x10] sm:$0x3] %vm268_vm1, %v6248_v0  ;;  %272 = vst.msk [vmem:[#allocation2 + $0x28] sm:$0x3] %vm268_vm1, %v6248_v0 }
  0x27   : > { %275 = vst.msk [vmem:[#allocation2 + $0x40] sm:$0x3] %vm268_vm1, %v6248_v0  ;;  %278 = vst.msk [vmem:[#allocation2 + $0x58] sm:$0x3] %vm268_vm1, %v6248_v0 }
  0x28   : > { %281 = vst.msk [vmem:[#allocation2 + $0x70] sm:$0x3] %vm268_vm1, %v6248_v0  ;;  %284 = vst.msk [vmem:[#allocation2 + $0x88] sm:$0x3] %vm268_vm1, %v6248_v0 }
  0x29   : > { %287 = vst.msk [vmem:[#allocation2 + $0xa0] sm:$0x3] %vm268_vm1, %v6248_v0  ;;  %290 = vst.msk [vmem:[#allocation2 + $0xb8] sm:$0x3] %vm268_vm1, %v6248_v0 }
  0x2a   : > { %293 = vst.msk [vmem:[#allocation2 + $0xd0] sm:$0x3] %vm268_vm1, %v6248_v0  ;;  %296 = vst.msk [vmem:[#allocation2 + $0xe8] sm:$0x3] %vm268_vm1, %v6248_v0 }
  0x2b   : > { %299 = vst.msk [vmem:[#allocation2 + $0x100] sm:$0x3] %vm268_vm1, %v6248_v0  ;;  %302 = vst.msk [vmem:[#allocation2 + $0x118] sm:$0x3] %vm268_vm1, %v6248_v0 }
  0x2c   : > { %305 = vst.msk [vmem:[#allocation2 + $0x130] sm:$0x3] %vm268_vm1, %v6248_v0  ;;  %308 = vst.msk [vmem:[#allocation2 + $0x148] sm:$0x3] %vm268_vm1, %v6248_v0 }
  0x2d   : > { %311 = vst.msk [vmem:[#allocation2 + $0x160] sm:$0x3] %vm268_vm1, %v6248_v0  ;;  %314 = vst.msk [vmem:[#allocation2 + $0x178] sm:$0x3] %vm268_vm1, %v6248_v0 }
  0x2e   : > { %317 = vst.msk [vmem:[#allocation2 + $0x190] sm:$0x3] %vm268_vm1, %v6248_v0  ;;  %320 = vst.msk [vmem:[#allocation2 + $0x1a8] sm:$0x3] %vm268_vm1, %v6248_v0 }
  0x2f PF: > { %v4563_v1 = vld [vmem:[%s7921_s2 + $0x20] sm:$0xff]  ;;  %v4564_v2 = vld [vmem:[%s7921_s2 + $0x28] sm:$0xff]  ;;  %vm394_vm2 = vcmask 261120   ;;  %v4565_v6 = vld [vmem:[%s7921_s2 + $0x30] sm:$0xff]  ;;  %vm4131_vm3 = vcmask 1043456   ;;  %vm4034_vm4 = vcmask 31744  }
  0x30   : > { %v4703_v3 = vld [vmem:[%s7921_s2 + $0x80] sm:$0xff]  ;;  %v5831_v4 = vpack.c.bf16 %v4564_v2, %v4563_v1  ;;  %v4704_v5 = vld [vmem:[%s7921_s2 + $0x88] sm:$0xff]  ;;  %v4566_v7 = vld [vmem:[%s7921_s2 + $0x38] sm:$0xff] }
  0x31   : > { %v5863_v8 = vpack.c.bf16 %v4704_v5, %v4703_v3  ;;  %v5835_v9 = vpack.c.bf16 %v4566_v7, %v4565_v6  ;;  %v4705_v10 = vld [vmem:[%s7921_s2 + $0x90] sm:$0xff]  ;;  %v4706_v11 = vld [vmem:[%s7921_s2 + $0x98] sm:$0xff]  ;;  %v357_v12 = vld [vmem:[#allocation2 + $0x1] sm:$0xff] }
  0x32   : > { %5832 = vmatprep.subr.bf16.mxu1 %v5831_v4  ;;  %v5867_v13 = vpack.c.bf16 %v4706_v11, %v4705_v10  ;;  %5285 = vmatprep.mubr.msk.f32.mxu1 %vm394_vm2, %v357_v12  ;;  %v1818_v14 = vld [vmem:[#allocation2 + $0x19] sm:$0xff]  ;;  %v4740_v16 = vld [vmem:[%s7921_s2 + $0xa8] sm:$0xff]  ;;  %v6405_v20 = vld [vmem:[#allocation2 + $0x31] sm:$0xff] }
  0x33   : > { %5864 = vmatprep.subr.bf16.mxu0 %v5863_v8  ;;  %5834 = vmatpush3.bf16.msra.mxu1 %v5831_v4  ;;  %v4739_v15 = vld [vmem:[%s7921_s2 + $0xa0] sm:$0xff]  ;;  %v358_v18 = vld [vmem:[#allocation2 + $0x9] sm:$0xff]  ;;  %7975 = vst [vmem:[#allocation3_spill] sm:$0xff] %v6405_v20  ;;  %v4742_v22 = vld [vmem:[%s7921_s2 + $0xb8] sm:$0xff] }
  0x34   : > { %5866 = vmatpush3.bf16.msra.mxu0 %v5863_v8  ;;  %5836 = vmatprep.subr.bf16.mxu1 %v5835_v9  ;;  %v5871_v17 = vpack.c.bf16 %v4740_v16, %v4739_v15  ;;  %v1819_v19 = vld [vmem:[#allocation2 + $0x21] sm:$0xff]  ;;  %v4741_v21 = vld [vmem:[%s7921_s2 + $0xb0] sm:$0xff]  ;;  %v6418_v24 = vld [vmem:[#allocation2 + $0x39] sm:$0xff] }
  0x35   : > { %5868 = vmatprep.subr.bf16.mxu0 %v5867_v13  ;;  %5509 = vmatprep.mubr.msk.f32.mxu0 %vm394_vm2, %v1818_v14  ;;  %v5875_v23 = vpack.c.bf16 %v4742_v22, %v4741_v21  ;;  %7976 = vst [vmem:[#allocation4_spill] sm:$0xff] %v6418_v24  ;;  %v6420_v25 = vld [vmem:[#allocation2 + $0x49] sm:$0xff]  ;;  %v353_v26 = vld [vmem:[%s7921_s2] sm:$0xff]  ;;  %v356_v30 = vld [vmem:[%s7921_s2 + $0x18] sm:$0xff] }
  0x36   : > { %7977 = vst [vmem:[#allocation5_spill] sm:$0xff] %v6420_v25  ;;  %v354_v27 = vld [vmem:[%s7921_s2 + $0x8] sm:$0xff]  ;;  %v355_v29 = vld [vmem:[%s7921_s2 + $0x10] sm:$0xff]  ;;  %v4775_v34 = vld [vmem:[%s7921_s2 + $0xc0] sm:$0xff] }
  0x37   : > { %5838 = vmatpush3.bf16.msra.mxu1 %v5835_v9  ;;  %v5839_v28 = vpack.c.bf16 %v354_v27, %v353_v26  ;;  %v6441_v31 = vld [vmem:[#allocation2 + $0x51] sm:$0xff]  ;;  %v6443_v32 = vld [vmem:[#allocation2 + $0x61] sm:$0xff]  ;;  %v5843_v33 = vpack.c.bf16 %v356_v30, %v355_v29  ;;  %v6461_v37 = vld [vmem:[#allocation2 + $0x69] sm:$0xff] }
  0x38   : > { %5870 = vmatpush3.bf16.msra.mxu0 %v5867_v13  ;;  %7978 = vst [vmem:[#allocation6_spill] sm:$0xff] %v6441_v31  ;;  %7979 = vst [vmem:[#allocation7_spill] sm:$0xff] %v6443_v32  ;;  %v4776_v35 = vld [vmem:[%s7921_s2 + $0xc8] sm:$0xff]  ;;  %v6463_v38 = vld [vmem:[#allocation2 + $0x79] sm:$0xff] }
  0x39   : > { %5872 = vmatprep.subr.bf16.mxu0 %v5871_v17  ;;  %5840 = vmatprep.subr.bf16.mxu1 %v5839_v28  ;;  %v6453_v36 = vpack.c.bf16 %v4776_v35, %v4775_v34  ;;  %7980 = vst [vmem:[#allocation8_spill] sm:$0xff] %v6461_v37  ;;  %7981 = vst [vmem:[#allocation9_spill] sm:$0xff] %v6463_v38  ;;  %v6474_v39 = vld [vmem:[#allocation2 + $0x81] sm:$0xff]  ;;  %v6476_v40 = vld [vmem:[#allocation2 + $0x91] sm:$0xff] }
  0x3a   : > { %5286 = vmatmul.mubr.msk.f32.vlgmr.msra.gmra.mrb[0].mxu1 %vm394_vm2, %v358_v18  ;;  %7982 = vst [vmem:[#allocation10_spill] sm:$0xff] %v6474_v39  ;;  %7983 = vst [vmem:[#allocation11_spill] sm:$0xff] %v6476_v40  ;;  %v6486_v41 = vld [vmem:[#allocation2 + $0x99] sm:$0xff]  ;;  %v6488_v42 = vld [vmem:[#allocation2 + $0xa9] sm:$0xff] }
  0x3b   : > { %5510 = vmatmul.mubr.msk.f32.vlgmr.msra.gmra.mrb[0].mxu0 %vm394_vm2, %v1819_v19  ;;  %5288 = vmatprep.mubr.msk.f32.mxu1 %vm394_vm2, %v1818_v14  ;;  %7984 = vst [vmem:[#allocation12_spill] sm:$0xff] %v6486_v41  ;;  %7985 = vst [vmem:[#allocation13_spill] sm:$0xff] %v6488_v42  ;;  %v6498_v43 = vld [vmem:[#allocation2 + $0xb1] sm:$0xff]  ;;  %v6500_v44 = vld [vmem:[#allocation2 + $0xc1] sm:$0xff] }
  0x3c   : > { %5874 = vmatpush3.bf16.msra.mxu0 %v5871_v17  ;;  %5512 = vmatprep.mubr.msk.f32.mxu0 %vm394_vm2, %v6405_v20  ;;  %7986 = vst [vmem:[#allocation14_spill] sm:$0xff] %v6498_v43  ;;  %7987 = vst [vmem:[#allocation15_spill] sm:$0xff] %v6500_v44  ;;  %v6510_v45 = vld [vmem:[#allocation2 + $0xc9] sm:$0xff]  ;;  %v4631_v46 = vld [vmem:[%s7921_s2 + $0x40] sm:$0xff] }
  0x3d   : > { %5876 = vmatprep.subr.bf16.mxu0 %v5875_v23  ;;  %5842 = vmatpush3.bf16.msra.mxu1 %v5839_v28  ;;  %7988 = vst [vmem:[#allocation16_spill] sm:$0xff] %v6510_v45  ;;  %v6515_v47 = vld [vmem:[#allocation2 + $0xd9] sm:$0xff]  ;;  %v4632_v48 = vld [vmem:[%s7921_s2 + $0x48] sm:$0xff]  ;;  %v6533_v51 = vld [vmem:[#allocation2 + $0xf1] sm:$0xff] }
  0x3e   : > { %5289 = vmatmul.mubr.msk.f32.gmra.mrb[2].mxu1 %vm394_vm2, %v1819_v19  ;;  %5844 = vmatprep.subr.bf16.mxu1 %v5843_v33  ;;  %7989 = vst [vmem:[#allocation17_spill] sm:$0xff] %v6515_v47  ;;  %v6522_v49 = vpack.c.bf16 %v4632_v48, %v4631_v46  ;;  %v6530_v50 = vld [vmem:[#allocation2 + $0xe1] sm:$0xff]  ;;  %7991 = vst [vmem:[#allocation19_spill] sm:$0xff] %v6533_v51  ;;  %v6543_v52 = vld [vmem:[#allocation2 + $0xf9] sm:$0xff] }
  0x3f   : > { %5513 = vmatmul.mubr.msk.f32.gmra.mrb[2].mxu0 %vm394_vm2, %v6418_v24  ;;  %5291 = vmatprep.mubr.msk.f32.mxu1 %vm394_vm2, %v6405_v20  ;;  %7990 = vst [vmem:[#allocation18_spill] sm:$0xff] %v6530_v50  ;;  %7992 = vst [vmem:[#allocation20_spill] sm:$0xff] %v6543_v52  ;;  %v6545_v53 = vld [vmem:[#allocation2 + $0x109] sm:$0xff]  ;;  %v6555_v54 = vld [vmem:[#allocation2 + $0x111] sm:$0xff] }
  0x40   : > { %5515 = vmatprep.mubr.msk.f32.mxu0 %vm394_vm2, %v6420_v25  ;;  %5878 = vmatpush3.bf16.msra.mxu0 %v5875_v23  ;;  %7993 = vst [vmem:[#allocation21_spill] sm:$0xff] %v6545_v53  ;;  %7994 = vst [vmem:[#allocation22_spill] sm:$0xff] %v6555_v54  ;;  %v6557_v55 = vld [vmem:[#allocation2 + $0x121] sm:$0xff]  ;;  %v6567_v56 = vld [vmem:[#allocation2 + $0x129] sm:$0xff] }
  0x41   : > { %5880 = vmatprep.subr.bf16.mxu0 %v6453_v36  ;;  %5846 = vmatpush3.bf16.msra.mxu1 %v5843_v33  ;;  %7995 = vst [vmem:[#allocation23_spill] sm:$0xff] %v6557_v55  ;;  %7996 = vst [vmem:[#allocation24_spill] sm:$0xff] %v6567_v56  ;;  %v6569_v57 = vld [vmem:[#allocation2 + $0x139] sm:$0xff]  ;;  %v6579_v58 = vld [vmem:[#allocation2 + $0x141] sm:$0xff] }
  0x42   : > { %5292 = vmatmul.mubr.msk.f32.gmra.mrb[4].mxu1 %vm394_vm2, %v6418_v24  ;;  %5848 = vmatprep.subr.bf16.mxu1 %v6522_v49  ;;  %7997 = vst [vmem:[#allocation25_spill] sm:$0xff] %v6569_v57  ;;  %7998 = vst [vmem:[#allocation26_spill] sm:$0xff] %v6579_v58  ;;  %v6581_v59 = vld [vmem:[#allocation2 + $0x151] sm:$0xff]  ;;  %v6591_v60 = vld [vmem:[#allocation2 + $0x159] sm:$0xff] }
  0x43   : > { %5516 = vmatmul.mubr.msk.f32.gmra.mrb[4].mxu0 %vm394_vm2, %v6441_v31  ;;  %5294 = vmatprep.mubr.msk.f32.mxu1 %vm394_vm2, %v6420_v25  ;;  %7999 = vst [vmem:[#allocation27_spill] sm:$0xff] %v6581_v59  ;;  %8000 = vst [vmem:[#allocation28_spill] sm:$0xff] %v6591_v60  ;;  %v6593_v61 = vld [vmem:[#allocation2 + $0x169] sm:$0xff]  ;;  %v6603_v62 = vld [vmem:[#allocation2 + $0x171] sm:$0xff] }
  0x44   : > { %5518 = vmatprep.mubr.msk.f32.mxu0 %vm394_vm2, %v6443_v32  ;;  %8001 = vst [vmem:[#allocation29_spill] sm:$0xff] %v6593_v61  ;;  %8002 = vst [vmem:[#allocation30_spill] sm:$0xff] %v6603_v62  ;;  %v6605_v63 = vld [vmem:[#allocation2 + $0x181] sm:$0xff]  ;;  %v6615_v0 = vld [vmem:[#allocation2 + $0x189] sm:$0xff] }
  0x45   : > { %8003 = vst [vmem:[#allocation31_spill] sm:$0xff] %v6605_v63  ;;  %8004 = vst [vmem:[#allocation32_spill] sm:$0xff] %v6615_v0  ;;  %v321_v1 = vld [vmem:[#allocation2] sm:$0xff]  ;;  %v4777_v3 = vld [vmem:[%s7921_s2 + $0xd0] sm:$0xff] }
  0x46   : > { %5295 = vmatmul.mubr.msk.f32.gmra.mrb[6].mxu1 %vm394_vm2, %v6441_v31  ;;  %v6617_v2 = vld [vmem:[#allocation2 + $0x1a] sm:$0xff]  ;;  %v322_v5 = vld [vmem:[#allocation2 + $0x8] sm:$0xff]  ;;  %v4633_v6 = vld [vmem:[%s7921_s2 + $0x50] sm:$0xff] }
  0x47   : > { %5519 = vmatmul.mubr.msk.f32.gmra.mrb[6].mxu0 %vm394_vm2, %v6461_v37  ;;  %5297 = vmatprep.mubr.msk.f32.mxu1 %vm394_vm2, %v6443_v32  ;;  %v4778_v4 = vld [vmem:[%s7921_s2 + $0xd8] sm:$0xff]  ;;  %v6638_v8 = vld [vmem:[#allocation2 + $0x22] sm:$0xff]  ;;  %v6668_v19 = vld [vmem:[#allocation2 + $0x30] sm:$0xff] }
  0x48   : > { %5521 = vmatprep.mubr.msk.f32.mxu0 %vm394_vm2, %v6463_v38  ;;  %v4634_v7 = vld [vmem:[%s7921_s2 + $0x58] sm:$0xff]  ;;  %v5883_v11 = vpack.c.bf16 %v4778_v4, %v4777_v3  ;;  %v4811_v13 = vld [vmem:[%s7921_s2 + $0xe0] sm:$0xff]  ;;  %v4812_v14 = vld [vmem:[%s7921_s2 + $0xe8] sm:$0xff] }
  0x49   : > { %v6640_v9 = vld [vmem:[#allocation2 + $0x18] sm:$0xff]  ;;  %v5851_v12 = vpack.c.bf16 %v4634_v7, %v4633_v6  ;;  %v6655_v15 = vld [vmem:[#allocation2 + $0x20] sm:$0xff]  ;;  %v4668_v17 = vld [vmem:[%s7921_s2 + $0x68] sm:$0xff]  ;;  %v6673_v22 = vpack.c.bf16 %v4812_v14, %v4811_v13 }
  0x4a   : > { %5298 = vmatmul.mubr.msk.f32.gmra.mrb[8].mxu1 %vm394_vm2, %v6461_v37  ;;  %8005 = vst [vmem:[#allocation33_spill] sm:$0xff] %v6640_v9  ;;  %v6642_v10 = vld [vmem:[#allocation2 + $0x32] sm:$0xff]  ;;  %8006 = vst [vmem:[#allocation34_spill] sm:$0xff] %v6655_v15  ;;  %v4667_v16 = vld [vmem:[%s7921_s2 + $0x60] sm:$0xff] }
  0x4b   : > { %5522 = vmatmul.mubr.msk.f32.gmra.mrb[8].mxu0 %vm394_vm2, %v6474_v39  ;;  %5300 = vmatprep.mubr.msk.f32.mxu1 %vm394_vm2, %v6463_v38  ;;  %v6666_v18 = vld [vmem:[#allocation2 + $0x3a] sm:$0xff]  ;;  %v6670_v21 = vld [vmem:[#allocation2 + $0x4a] sm:$0xff]  ;;  %v6677_v23 = vpack.c.bf16 %v4668_v17, %v4667_v16  ;;  %v6687_v27 = vld [vmem:[#allocation2 + $0x52] sm:$0xff] }
  0x4c   : > { %5524 = vmatprep.mubr.msk.f32.mxu0 %vm394_vm2, %v6476_v40  ;;  %v6683_v26 = vld [vmem:[#allocation2 + $0x38] sm:$0xff]  ;;  %v6689_v28 = vld [vmem:[#allocation2 + $0x48] sm:$0xff]  ;;  %v6701_v30 = vld [vmem:[#allocation2 + $0x50] sm:$0xff] }
  0x4d   : > { %v6691_v29 = vld [vmem:[#allocation2 + $0x62] sm:$0xff]  ;;  %v6705_v33 = vld [vmem:[#allocation2 + $0x6a] sm:$0xff]  ;;  %v6709_v35 = vld [vmem:[#allocation2 + $0x7a] sm:$0xff] }
  0x4e   : > { %5301 = vmatmul.mubr.msk.f32.gmra.mrb[10].mxu1 %vm394_vm2, %v6474_v39  ;;  %v6707_v34 = vld [vmem:[#allocation2 + $0x60] sm:$0xff]  ;;  %v6723_v48 = vld [vmem:[#allocation2 + $0x78] sm:$0xff]  ;;  %v6739_v4 = vld [vmem:[#allocation2 + $0x90] sm:$0xff] }
  0x4f   : > { %5525 = vmatmul.mubr.msk.f32.gmra.mrb[10].mxu0 %vm394_vm2, %v6486_v41  ;;  %5303 = vmatprep.mubr.msk.f32.mxu1 %vm394_vm2, %v6476_v40  ;;  %v6721_v46 = vld [vmem:[#allocation2 + $0x82] sm:$0xff]  ;;  %v6737_v3 = vld [vmem:[#allocation2 + $0x9a] sm:$0xff]  ;;  %v6753_v7 = vld [vmem:[#allocation2 + $0xb2] sm:$0xff] }
  0x50   : > { %5527 = vmatprep.mubr.msk.f32.mxu0 %vm394_vm2, %v6488_v42  ;;  %v6749_v6 = vld [vmem:[#allocation2 + $0x98] sm:$0xff]  ;;  %v6765_v13 = vld [vmem:[#allocation2 + $0xb0] sm:$0xff]  ;;  %v6771_v16 = vld [vmem:[#allocation2 + $0xc0] sm:$0xff] }
  0x51   : > { %v6769_v14 = vld [vmem:[#allocation2 + $0xca] sm:$0xff]  ;;  %v6773_v17 = vld [vmem:[#allocation2 + $0xda] sm:$0xff]  ;;  %v6881_v32 = vld [vmem:[#allocation2 + $0x172] sm:$0xff] }
  0x52   : > { %5304 = vmatmul.mubr.msk.f32.gmra.mrb[12].mxu1 %vm394_vm2, %v6486_v41  ;;  %v6861_v41 = vld [vmem:[#allocation2 + $0x140] sm:$0xff]  ;;  %v6867_v39 = vld [vmem:[#allocation2 + $0x150] sm:$0xff]  ;;  %v6877_v37 = vld [vmem:[#allocation2 + $0x158] sm:$0xff]  ;;  %8010 = vst [vmem:[#allocation38_spill] sm:$0xff] %v6881_v32 }
  0x53   : > { %5528 = vmatmul.mubr.msk.f32.gmra.mrb[12].mxu0 %vm394_vm2, %v6498_v43  ;;  %5306 = vmatprep.mubr.msk.f32.mxu1 %vm394_vm2, %v6488_v42  ;;  %v6853_v42 = vld [vmem:[#allocation2 + $0x152] sm:$0xff]  ;;  %v6865_v40 = vld [vmem:[#allocation2 + $0x15a] sm:$0xff]  ;;  %v6869_v38 = vld [vmem:[#allocation2 + $0x16a] sm:$0xff] }
  0x54   : > { %5530 = vmatprep.mubr.msk.f32.mxu0 %vm394_vm2, %v6500_v44  ;;  %8007 = vst [vmem:[#allocation35_spill] sm:$0xff] %v6853_v42  ;;  %8008 = vst [vmem:[#allocation36_spill] sm:$0xff] %v6865_v40  ;;  %v6883_v31 = vld [vmem:[#allocation2 + $0x168] sm:$0xff]  ;;  %v6893_v24 = vld [vmem:[#allocation2 + $0x170] sm:$0xff] }
  0x55   : > { %8009 = vst [vmem:[#allocation37_spill] sm:$0xff] %v6869_v38  ;;  %v6885_v25 = vld [vmem:[#allocation2 + $0x182] sm:$0xff]  ;;  %8012 = vst [vmem:[#allocation40_spill] sm:$0xff] %v6893_v24 }
  0x56   : > { %5307 = vmatmul.mubr.msk.f32.gmra.mrb[14].mxu1 %vm394_vm2, %v6498_v43  ;;  %v6851_v43 = vld [vmem:[#allocation2 + $0x138] sm:$0xff]  ;;  %8011 = vst [vmem:[#allocation39_spill] sm:$0xff] %v6885_v25  ;;  %v1037_v20 = vld [vmem:[#allocation2 + $0x2] sm:$0xff] }
  0x57   : > { %5531 = vmatmul.mubr.msk.f32.gmra.mrb[14].mxu0 %vm394_vm2, %v6510_v45  ;;  %5309 = vmatprep.mubr.msk.f32.mxu1 %vm394_vm2, %v6500_v44  ;;  %v6849_v44 = vld [vmem:[#allocation2 + $0x142] sm:$0xff] }
  0x58   : > { %5533 = vmatprep.mubr.msk.f32.mxu0 %vm394_vm2, %v6515_v47 }
  0x5a   : > { %5310 = vmatmul.mubr.msk.f32.gmra.mrb[16].mxu1 %vm394_vm2, %v6510_v45  ;;  %v6845_v45 = vld [vmem:[#allocation2 + $0x128] sm:$0xff] }
  0x5b   : > { %5534 = vmatmul.mubr.msk.f32.gmra.mrb[16].mxu0 %vm394_vm2, %v6530_v50  ;;  %5312 = vmatprep.mubr.msk.f32.mxu1 %vm394_vm2, %v6515_v47  ;;  %v6837_v47 = vld [vmem:[#allocation2 + $0x13a] sm:$0xff] }
  0x5c   : > { %5536 = vmatprep.mubr.msk.f32.mxu0 %vm394_vm2, %v6533_v51 }
  0x5e   : > { %5313 = vmatmul.mubr.msk.f32.gmra.mrb[18].mxu1 %vm394_vm2, %v6530_v50  ;;  %v6835_v50 = vld [vmem:[#allocation2 + $0x120] sm:$0xff] }
  0x5f   : > { %5537 = vmatmul.mubr.msk.f32.gmra.mrb[18].mxu0 %vm394_vm2, %v6543_v52  ;;  %5315 = vmatprep.mubr.msk.f32.mxu1 %vm394_vm2, %v6533_v51  ;;  %v6833_v51 = vld [vmem:[#allocation2 + $0x12a] sm:$0xff] }
  0x60   : > { %5539 = vmatprep.mubr.msk.f32.mxu0 %vm394_vm2, %v6545_v53 }
  0x62   : > { %5316 = vmatmul.mubr.msk.f32.gmra.mrb[20].mxu1 %vm394_vm2, %v6543_v52  ;;  %v6829_v52 = vld [vmem:[#allocation2 + $0x110] sm:$0xff] }
  0x63   : > { %5540 = vmatmul.mubr.msk.f32.gmra.mrb[20].mxu0 %vm394_vm2, %v6555_v54  ;;  %5318 = vmatprep.mubr.msk.f32.mxu1 %vm394_vm2, %v6545_v53  ;;  %v6821_v53 = vld [vmem:[#allocation2 + $0x122] sm:$0xff] }
  0x64   : > { %5542 = vmatprep.mubr.msk.f32.mxu0 %vm394_vm2, %v6557_v55 }
  0x66   : > { %5319 = vmatmul.mubr.msk.f32.gmra.mrb[22].mxu1 %vm394_vm2, %v6555_v54  ;;  %v6819_v54 = vld [vmem:[#allocation2 + $0x108] sm:$0xff] }
  0x67   : > { %5543 = vmatmul.mubr.msk.f32.gmra.mrb[22].mxu0 %vm394_vm2, %v6567_v56  ;;  %5321 = vmatprep.mubr.msk.f32.mxu1 %vm394_vm2, %v6557_v55  ;;  %v6817_v55 = vld [vmem:[#allocation2 + $0x112] sm:$0xff] }
  0x68   : > { %5545 = vmatprep.mubr.msk.f32.mxu0 %vm394_vm2, %v6569_v57 }
  0x6a   : > { %5322 = vmatmul.mubr.msk.f32.gmra.mrb[24].mxu1 %vm394_vm2, %v6567_v56  ;;  %v6813_v56 = vld [vmem:[#allocation2 + $0xf8] sm:$0xff] }
  0x6b   : > { %5546 = vmatmul.mubr.msk.f32.gmra.mrb[24].mxu0 %vm394_vm2, %v6579_v58  ;;  %5324 = vmatprep.mubr.msk.f32.mxu1 %vm394_vm2, %v6569_v57  ;;  %v6805_v57 = vld [vmem:[#allocation2 + $0x10a] sm:$0xff] }
  0x6c   : > { %5548 = vmatprep.mubr.msk.f32.mxu0 %vm394_vm2, %v6581_v59 }
  0x6e   : > { %5325 = vmatmul.mubr.msk.f32.gmra.mrb[26].mxu1 %vm394_vm2, %v6579_v58  ;;  %v6803_v58 = vld [vmem:[#allocation2 + $0xf0] sm:$0xff] }
  0x6f   : > { %5549 = vmatmul.mubr.msk.f32.gmra.mrb[26].mxu0 %vm394_vm2, %v6591_v60  ;;  %5327 = vmatprep.mubr.msk.f32.mxu1 %vm394_vm2, %v6581_v59  ;;  %v6801_v59 = vld [vmem:[#allocation2 + $0xfa] sm:$0xff] }
  0x70   : > { %5551 = vmatprep.mubr.msk.f32.mxu0 %vm394_vm2, %v6593_v61 }
  0x72   : > { %5328 = vmatmul.mubr.msk.f32.gmra.mrb[28].mxu1 %vm394_vm2, %v6591_v60  ;;  %v6797_v60 = vld [vmem:[#allocation2 + $0xe0] sm:$0xff] }
  0x73   : > { %5552 = vmatmul.mubr.msk.f32.gmra.mrb[28].mxu0 %vm394_vm2, %v6603_v62  ;;  %5330 = vmatprep.mubr.msk.f32.mxu1 %vm394_vm2, %v6593_v61  ;;  %v6789_v61 = vld [vmem:[#allocation2 + $0xf2] sm:$0xff] }
  0x74   : > { %5554 = vmatprep.mubr.msk.f32.mxu0 %vm394_vm2, %v6605_v63  ;;  %v6785_v63 = vld [vmem:[#allocation2 + $0xe2] sm:$0xff] }
  0x76   : > { %5331 = vmatmul.mubr.msk.f32.gmra.mrb[30].mxu1 %vm394_vm2, %v6603_v62  ;;  %v6787_v62 = vld [vmem:[#allocation2 + $0xd8] sm:$0xff] }
  0x77   : > { %5555 = vmatmul.mubr.msk.f32.gmra.mrb[30].mxu0 %vm394_vm2, %v6615_v0  ;;  %5341 = vmatprep.mubr.msk.f32.mxu1 %vm394_vm2, %v321_v1  ;;  %v6733_v1 = vld [vmem:[#allocation2 + $0x80] sm:$0xff]  ;;  %v6781_v0 = vld [vmem:[#allocation2 + $0xc8] sm:$0xff] }
  0x78   : > { %5565 = vmatprep.mubr.msk.f32.mxu0 %vm394_vm2, %v6617_v2 }
  0x7a   : > { %5342 = vmatmul.mubr.msk.f32.vlgmr.msra.gmra.mrb[0].mxu1 %vm394_vm2, %v322_v5  ;;  %v6741_v5 = vld [vmem:[#allocation2 + $0xaa] sm:$0xff] }
  0x7b   : > { %5566 = vmatmul.mubr.msk.f32.vlgmr.msra.gmra.mrb[0].mxu0 %vm394_vm2, %v6638_v8  ;;  %5344 = vmatprep.mubr.msk.f32.mxu1 %vm394_vm2, %v6640_v9  ;;  %v4813_v9 = vld [vmem:[%s7921_s2 + $0xf0] sm:$0xff] }
  0x7c   : > { %5882 = vmatpush3.bf16.msra.mxu0 %v6453_v36  ;;  %5568 = vmatprep.mubr.msk.f32.mxu0 %vm394_vm2, %v6642_v10  ;;  %v6717_v36 = vld [vmem:[#allocation2 + $0x68] sm:$0xff] }
  0x7d   : > { %5884 = vmatprep.subr.bf16.mxu0 %v5883_v11  ;;  %5850 = vmatpush3.bf16.msra.mxu1 %v6522_v49  ;;  %v6725_v49 = vld [vmem:[#allocation2 + $0x92] sm:$0xff] }
  0x7e   : > { %5345 = vmatmul.mubr.msk.f32.gmra.mrb[2].mxu1 %vm394_vm2, %v6655_v15  ;;  %5852 = vmatprep.subr.bf16.mxu1 %v5851_v12  ;;  %v6897_v15 = vld [vmem:[#allocation2 + $0x18a] sm:$0xff] }
  0x7f   : > { %5569 = vmatmul.mubr.msk.f32.gmra.mrb[2].mxu0 %vm394_vm2, %v6666_v18  ;;  %5347 = vmatprep.mubr.msk.f32.mxu1 %vm394_vm2, %v6668_v19  ;;  %8013 = vst [vmem:[#allocation41_spill] sm:$0xff] %v6897_v15 }
  0x80   : > { %5571 = vmatprep.mubr.msk.f32.mxu0 %vm394_vm2, %v6670_v21  ;;  %5886 = vmatpush3.bf16.msra.mxu0 %v5883_v11  ;;  %v6755_v11 = vld [vmem:[#allocation2 + $0xa8] sm:$0xff] }
  0x81   : > { %5854 = vmatpush3.bf16.msra.mxu1 %v5851_v12  ;;  %5888 = vmatprep.subr.bf16.mxu0 %v6673_v22  ;;  %v6757_v12 = vld [vmem:[#allocation2 + $0xc2] sm:$0xff] }
  0x82   : > { %5348 = vmatmul.mubr.msk.f32.gmra.mrb[4].mxu1 %vm394_vm2, %v6683_v26  ;;  %5856 = vmatprep.subr.bf16.mxu1 %v6677_v23 }
  0x83   : > { %5572 = vmatmul.mubr.msk.f32.gmra.mrb[4].mxu0 %vm394_vm2, %v6687_v27  ;;  %5350 = vmatprep.mubr.msk.f32.mxu1 %vm394_vm2, %v6689_v28 }
  0x84   : > { %5574 = vmatprep.mubr.msk.f32.mxu0 %vm394_vm2, %v6691_v29 }
  0x86   : > { %5351 = vmatmul.mubr.msk.f32.gmra.mrb[6].mxu1 %vm394_vm2, %v6701_v30 }
  0x87   : > { %5575 = vmatmul.mubr.msk.f32.gmra.mrb[6].mxu0 %vm394_vm2, %v6705_v33  ;;  %5353 = vmatprep.mubr.msk.f32.mxu1 %vm394_vm2, %v6707_v34 }
  0x88   : > { %5577 = vmatprep.mubr.msk.f32.mxu0 %vm394_vm2, %v6709_v35 }
  0x8a   : > { %5354 = vmatmul.mubr.msk.f32.gmra.mrb[8].mxu1 %vm394_vm2, %v6717_v36 }
  0x8b   : > { %5578 = vmatmul.mubr.msk.f32.gmra.mrb[8].mxu0 %vm394_vm2, %v6721_v46  ;;  %5356 = vmatprep.mubr.msk.f32.mxu1 %vm394_vm2, %v6723_v48 }
  0x8c   : > { %5580 = vmatprep.mubr.msk.f32.mxu0 %vm394_vm2, %v6725_v49 }
  0x8e   : > { %5357 = vmatmul.mubr.msk.f32.gmra.mrb[10].mxu1 %vm394_vm2, %v6733_v1 }
  0x8f   : > { %5581 = vmatmul.mubr.msk.f32.gmra.mrb[10].mxu0 %vm394_vm2, %v6737_v3  ;;  %5359 = vmatprep.mubr.msk.f32.mxu1 %vm394_vm2, %v6739_v4 }
  0x90   : > { %5583 = vmatprep.mubr.msk.f32.mxu0 %vm394_vm2, %v6741_v5 }
  0x92   : > { %5360 = vmatmul.mubr.msk.f32.gmra.mrb[12].mxu1 %vm394_vm2, %v6749_v6 }
  0x93   : > { %5584 = vmatmul.mubr.msk.f32.gmra.mrb[12].mxu0 %vm394_vm2, %v6753_v7  ;;  %5362 = vmatprep.mubr.msk.f32.mxu1 %vm394_vm2, %v6755_v11 }
  0x94   : > { %5586 = vmatprep.mubr.msk.f32.mxu0 %vm394_vm2, %v6757_v12 }
  0x96   : > { %5363 = vmatmul.mubr.msk.f32.gmra.mrb[14].mxu1 %vm394_vm2, %v6765_v13 }
  0x97   : > { %5587 = vmatmul.mubr.msk.f32.gmra.mrb[14].mxu0 %vm394_vm2, %v6769_v14  ;;  %5365 = vmatprep.mubr.msk.f32.mxu1 %vm394_vm2, %v6771_v16 }
  0x98   : > { %5589 = vmatprep.mubr.msk.f32.mxu0 %vm394_vm2, %v6773_v17 }
  0x9a   : > { %5366 = vmatmul.mubr.msk.f32.gmra.mrb[16].mxu1 %vm394_vm2, %v6781_v0 }
  0x9b   : > { %5590 = vmatmul.mubr.msk.f32.gmra.mrb[16].mxu0 %vm394_vm2, %v6785_v63  ;;  %5368 = vmatprep.mubr.msk.f32.mxu1 %vm394_vm2, %v6787_v62 }
  0x9c   : > { %5592 = vmatprep.mubr.msk.f32.mxu0 %vm394_vm2, %v6789_v61 }
  0x9e   : > { %5369 = vmatmul.mubr.msk.f32.gmra.mrb[18].mxu1 %vm394_vm2, %v6797_v60 }
  0x9f   : > { %5593 = vmatmul.mubr.msk.f32.gmra.mrb[18].mxu0 %vm394_vm2, %v6801_v59  ;;  %5371 = vmatprep.mubr.msk.f32.mxu1 %vm394_vm2, %v6803_v58 }
  0xa0   : > { %5595 = vmatprep.mubr.msk.f32.mxu0 %vm394_vm2, %v6805_v57 }
  0xa2   : > { %5372 = vmatmul.mubr.msk.f32.gmra.mrb[20].mxu1 %vm394_vm2, %v6813_v56 }
  0xa3   : > { %5596 = vmatmul.mubr.msk.f32.gmra.mrb[20].mxu0 %vm394_vm2, %v6817_v55  ;;  %5374 = vmatprep.mubr.msk.f32.mxu1 %vm394_vm2, %v6819_v54 }
  0xa4   : > { %5598 = vmatprep.mubr.msk.f32.mxu0 %vm394_vm2, %v6821_v53 }
  0xa6   : > { %5375 = vmatmul.mubr.msk.f32.gmra.mrb[22].mxu1 %vm394_vm2, %v6829_v52 }
  0xa7   : > { %5599 = vmatmul.mubr.msk.f32.gmra.mrb[22].mxu0 %vm394_vm2, %v6833_v51  ;;  %5377 = vmatprep.mubr.msk.f32.mxu1 %vm394_vm2, %v6835_v50 }
  0xa8   : > { %5601 = vmatprep.mubr.msk.f32.mxu0 %vm394_vm2, %v6837_v47 }
  0xaa   : > { %5378 = vmatmul.mubr.msk.f32.gmra.mrb[24].mxu1 %vm394_vm2, %v6845_v45 }
  0xab   : > { %5602 = vmatmul.mubr.msk.f32.gmra.mrb[24].mxu0 %vm394_vm2, %v6849_v44  ;;  %5380 = vmatprep.mubr.msk.f32.mxu1 %vm394_vm2, %v6851_v43 }
  0xac   : > { %5604 = vmatprep.mubr.msk.f32.mxu0 %vm394_vm2, %v6853_v42 }
  0xae   : > { %5381 = vmatmul.mubr.msk.f32.gmra.mrb[26].mxu1 %vm394_vm2, %v6861_v41 }
  0xaf   : > { %5605 = vmatmul.mubr.msk.f32.gmra.mrb[26].mxu0 %vm394_vm2, %v6865_v40  ;;  %5383 = vmatprep.mubr.msk.f32.mxu1 %vm394_vm2, %v6867_v39  ;;  %v4670_v40 = vld [vmem:[%s7921_s2 + $0x78] sm:$0xff] }
  0xb0   : > { %5607 = vmatprep.mubr.msk.f32.mxu0 %vm394_vm2, %v6869_v38  ;;  %v4669_v38 = vld [vmem:[%s7921_s2 + $0x70] sm:$0xff] }
  0xb2   : > { %5384 = vmatmul.mubr.msk.f32.gmra.mrb[28].mxu1 %vm394_vm2, %v6877_v37 }
  0xb3   : > { %5608 = vmatmul.mubr.msk.f32.gmra.mrb[28].mxu0 %vm394_vm2, %v6881_v32  ;;  %5386 = vmatprep.mubr.msk.f32.mxu1 %vm394_vm2, %v6883_v31  ;;  %v4814_v32 = vld [vmem:[%s7921_s2 + $0xf8] sm:$0xff] }
  0xb4   : > { %5610 = vmatprep.mubr.msk.f32.mxu0 %vm394_vm2, %v6885_v25  ;;  %v1038_v25 = vld [vmem:[#allocation2 + $0xa] sm:$0xff]  ;;  %v5891_v42 = vpack.c.bf16 %v4814_v32, %v4813_v9  ;;  %v8014_v32 = vld [vmem:[#allocation40_spill] sm:$0xff]  ;;  %v2630_v9 = vld [vmem:[#allocation2 + $0x1a0] sm:$0xff] }
  0xb6   : > { %5387 = vmatmul.mubr.msk.f32.gmra.mrb[30].mxu1 %vm394_vm2, %v6893_v24  ;;  %v5859_v24 = vpack.c.bf16 %v4670_v40, %v4669_v38  ;;  %v8015_v38 = vld [vmem:[#allocation35_spill] sm:$0xff]  ;;  %v7042_v40 = vld [vmem:[#allocation2 + $0x188] sm:$0xff] }
  0xb7   : > { %5611 = vmatmul.mubr.msk.f32.gmra.mrb[30].mxu0 %vm394_vm2, %v6897_v15  ;;  %5397 = vmatprep.mubr.msk.f32.mxu1 %vm394_vm2, %v1037_v20  ;;  %v4847_v20 = vld [vmem:[%s7921_s2 + $0x100] sm:$0xff]  ;;  %v4848_v15 = vld [vmem:[%s7921_s2 + $0x108] sm:$0xff] }
  0xb8   : > { %5621 = vmatprep.mubr.msk.f32.mxu0 %vm394_vm2, %v6668_v19 }
  0xba   : > { %5398 = vmatmul.mubr.msk.f32.vlgmr.msra.gmra.mrb[0].mxu1 %vm394_vm2, %v1038_v25  ;;  %v6933_v25 = vpack.c.bf16 %v4848_v15, %v4847_v20  ;;  %v8018_v15 = vld [vmem:[#allocation38_spill] sm:$0xff]  ;;  %v8019_v20 = vld [vmem:[#allocation33_spill] sm:$0xff] }
  0xbb   : > { %5622 = vmatmul.mubr.msk.f32.vlgmr.msra.gmra.mrb[0].mxu0 %vm394_vm2, %v6683_v26  ;;  %5400 = vmatprep.mubr.msk.f32.mxu1 %vm394_vm2, %v6617_v2  ;;  %v8016_v2 = vld [vmem:[#allocation36_spill] sm:$0xff] }
  0xbc   : > { %5890 = vmatpush3.bf16.msra.mxu0 %v6673_v22  ;;  %5624 = vmatprep.mubr.msk.f32.mxu0 %vm394_vm2, %v6689_v28  ;;  %v4849_v22 = vld [vmem:[%s7921_s2 + $0x110] sm:$0xff] }
  0xbd   : > { %5892 = vmatprep.subr.bf16.mxu0 %v5891_v42  ;;  %5858 = vmatpush3.bf16.msra.mxu1 %v6677_v23  ;;  %v4850_v23 = vld [vmem:[%s7921_s2 + $0x118] sm:$0xff] }
  0xbe   : > { %5401 = vmatmul.mubr.msk.f32.gmra.mrb[2].mxu1 %vm394_vm2, %v6638_v8  ;;  %5860 = vmatprep.subr.bf16.mxu1 %v5859_v24  ;;  %v8017_v8 = vld [vmem:[#allocation37_spill] sm:$0xff] }
  0xbf   : > { %5625 = vmatmul.mubr.msk.f32.gmra.mrb[2].mxu0 %vm394_vm2, %v6701_v30  ;;  %5403 = vmatprep.mubr.msk.f32.mxu1 %vm394_vm2, %v6642_v10 }
  0xc0   : > { %5627 = vmatprep.mubr.msk.f32.mxu0 %vm394_vm2, %v6707_v34  ;;  %5894 = vmatpush3.bf16.msra.mxu0 %v5891_v42  ;;  %v2629_v42 = vld [vmem:[#allocation2 + $0x198] sm:$0xff] }
  0xc1   : > { %5862 = vmatpush3.bf16.msra.mxu1 %v5859_v24  ;;  %5896 = vmatprep.subr.bf16.mxu0 %v6933_v25  ;;  %v7032_v24 = vld [vmem:[#allocation2 + $0x180] sm:$0xff] }
  0xc2   : > { %5404 = vmatmul.mubr.msk.f32.gmra.mrb[4].mxu1 %vm394_vm2, %v6666_v18 }
  0xc3   : > { %5628 = vmatmul.mubr.msk.f32.gmra.mrb[4].mxu0 %vm394_vm2, %v6717_v36  ;;  %5406 = vmatprep.mubr.msk.f32.mxu1 %vm394_vm2, %v6670_v21 }
  0xc4   : > { %5630 = vmatprep.mubr.msk.f32.mxu0 %vm394_vm2, %v6723_v48 }
  0xc6   : > { %5407 = vmatmul.mubr.msk.f32.gmra.mrb[6].mxu1 %vm394_vm2, %v6687_v27 }
  0xc7   : > { %5631 = vmatmul.mubr.msk.f32.gmra.mrb[6].mxu0 %vm394_vm2, %v6733_v1  ;;  %5409 = vmatprep.mubr.msk.f32.mxu1 %vm394_vm2, %v6691_v29 }
  0xc8   : > { %5633 = vmatprep.mubr.msk.f32.mxu0 %vm394_vm2, %v6739_v4 }
  0xca   : > { %5410 = vmatmul.mubr.msk.f32.gmra.mrb[8].mxu1 %vm394_vm2, %v6705_v33 }
  0xcb   : > { %5634 = vmatmul.mubr.msk.f32.gmra.mrb[8].mxu0 %vm394_vm2, %v6749_v6  ;;  %5412 = vmatprep.mubr.msk.f32.mxu1 %vm394_vm2, %v6709_v35 }
  0xcc   : > { %5636 = vmatprep.mubr.msk.f32.mxu0 %vm394_vm2, %v6755_v11 }
  0xce   : > { %5413 = vmatmul.mubr.msk.f32.gmra.mrb[10].mxu1 %vm394_vm2, %v6721_v46 }
  0xcf   : > { %5637 = vmatmul.mubr.msk.f32.gmra.mrb[10].mxu0 %vm394_vm2, %v6765_v13  ;;  %5415 = vmatprep.mubr.msk.f32.mxu1 %vm394_vm2, %v6725_v49 }
  0xd0   : > { %5639 = vmatprep.mubr.msk.f32.mxu0 %vm394_vm2, %v6771_v16 }
  0xd2   : > { %5416 = vmatmul.mubr.msk.f32.gmra.mrb[12].mxu1 %vm394_vm2, %v6737_v3 }
  0xd3   : > { %5640 = vmatmul.mubr.msk.f32.gmra.mrb[12].mxu0 %vm394_vm2, %v6781_v0  ;;  %5418 = vmatprep.mubr.msk.f32.mxu1 %vm394_vm2, %v6741_v5 }
  0xd4   : > { %5642 = vmatprep.mubr.msk.f32.mxu0 %vm394_vm2, %v6787_v62 }
  0xd6   : > { %5419 = vmatmul.mubr.msk.f32.gmra.mrb[14].mxu1 %vm394_vm2, %v6753_v7 }
  0xd7   : > { %5643 = vmatmul.mubr.msk.f32.gmra.mrb[14].mxu0 %vm394_vm2, %v6797_v60  ;;  %5421 = vmatprep.mubr.msk.f32.mxu1 %vm394_vm2, %v6757_v12 }
  0xd8   : > { %5645 = vmatprep.mubr.msk.f32.mxu0 %vm394_vm2, %v6803_v58 }
  0xda   : > { %5422 = vmatmul.mubr.msk.f32.gmra.mrb[16].mxu1 %vm394_vm2, %v6769_v14 }
  0xdb   : > { %5646 = vmatmul.mubr.msk.f32.gmra.mrb[16].mxu0 %vm394_vm2, %v6813_v56  ;;  %5424 = vmatprep.mubr.msk.f32.mxu1 %vm394_vm2, %v6773_v17 }
  0xdc   : > { %5648 = vmatprep.mubr.msk.f32.mxu0 %vm394_vm2, %v6819_v54 }
  0xde   : > { %5425 = vmatmul.mubr.msk.f32.gmra.mrb[18].mxu1 %vm394_vm2, %v6785_v63 }
  0xdf   : > { %5649 = vmatmul.mubr.msk.f32.gmra.mrb[18].mxu0 %vm394_vm2, %v6829_v52  ;;  %5427 = vmatprep.mubr.msk.f32.mxu1 %vm394_vm2, %v6789_v61 }
  0xe0   : > { %5651 = vmatprep.mubr.msk.f32.mxu0 %vm394_vm2, %v6835_v50 }
  0xe2   : > { %5428 = vmatmul.mubr.msk.f32.gmra.mrb[20].mxu1 %vm394_vm2, %v6801_v59 }
  0xe3   : > { %5652 = vmatmul.mubr.msk.f32.gmra.mrb[20].mxu0 %vm394_vm2, %v6845_v45  ;;  %5430 = vmatprep.mubr.msk.f32.mxu1 %vm394_vm2, %v6805_v57 }
  0xe4   : > { %5654 = vmatprep.mubr.msk.f32.mxu0 %vm394_vm2, %v6851_v43 }
  0xe6   : > { %5431 = vmatmul.mubr.msk.f32.gmra.mrb[22].mxu1 %vm394_vm2, %v6817_v55 }
  0xe7   : > { %5655 = vmatmul.mubr.msk.f32.gmra.mrb[22].mxu0 %vm394_vm2, %v6861_v41  ;;  %5433 = vmatprep.mubr.msk.f32.mxu1 %vm394_vm2, %v6821_v53 }
  0xe8   : > { %5657 = vmatprep.mubr.msk.f32.mxu0 %vm394_vm2, %v6867_v39 }
  0xea   : > { %5434 = vmatmul.mubr.msk.f32.gmra.mrb[24].mxu1 %vm394_vm2, %v6833_v51 }
  0xeb   : > { %5658 = vmatmul.mubr.msk.f32.gmra.mrb[24].mxu0 %vm394_vm2, %v6877_v37  ;;  %5436 = vmatprep.mubr.msk.f32.mxu1 %vm394_vm2, %v6837_v47 }
  0xec   : > { %5660 = vmatprep.mubr.msk.f32.mxu0 %vm394_vm2, %v6883_v31 }
  0xee   : > { %5437 = vmatmul.mubr.msk.f32.gmra.mrb[26].mxu1 %vm394_vm2, %v6849_v44 }
  0xef   : > { %5661 = vmatmul.mubr.msk.f32.gmra.mrb[26].mxu0 %vm394_vm2, %v8014_v32  ;;  %5439 = vmatprep.mubr.msk.f32.mxu1 %vm394_vm2, %v8015_v38  ;;  %v8023_v38 = vld [vmem:[#allocation5_spill] sm:$0xff] }
  0xf0   : > { %5663 = vmatprep.mubr.msk.f32.mxu0 %vm394_vm2, %v7032_v24 }
  0xf2   : > { %5440 = vmatmul.mubr.msk.f32.gmra.mrb[28].mxu1 %vm394_vm2, %v8016_v2  ;;  %v8021_v2 = vld [vmem:[#allocation34_spill] sm:$0xff] }
  0xf3   : > { %5664 = vmatmul.mubr.msk.f32.gmra.mrb[28].mxu0 %vm394_vm2, %v7042_v40  ;;  %5442 = vmatprep.mubr.msk.f32.mxu1 %vm394_vm2, %v8017_v8  ;;  %v8020_v8 = vld [vmem:[#allocation3_spill] sm:$0xff] }
  0xf4   : > { %5666 = vmatprep.mubr.msk.f32.mxu0 %vm394_vm2, %v2629_v42  ;;  %v5899_v42 = vpack.c.bf16 %v4850_v23, %v4849_v22  ;;  %v4016_v23 = vld [vmem:[%s6312_s7 + $0x78] sm:$0xff] }
  0xf6   : > { %5443 = vmatmul.mubr.msk.f32.gmra.mrb[30].mxu1 %vm394_vm2, %v8018_v15  ;;  %v8022_v15 = vld [vmem:[#allocation4_spill] sm:$0xff] }
  0xf7   : > { %5667 = vmatmul.mubr.msk.f32.gmra.mrb[30].mxu0 %vm394_vm2, %v2630_v9  ;;  %5453 = vmatprep.mubr.msk.f32.mxu1 %vm394_vm2, %v8019_v20  ;;  %v4015_v9 = vld [vmem:[%s6312_s7 + $0x70] sm:$0xff]  ;;  %v4017_v20 = vld [vmem:[%s6312_s7 + $0x80] sm:$0xff] }
  0xf8   : > { %5677 = vmatprep.mubr.msk.f32.mxu0 %vm394_vm2, %v8020_v8  ;;  %v8024_v8 = vld [vmem:[#allocation6_spill] sm:$0xff] }
  0xfa   : > { %5454 = vmatmul.mubr.msk.f32.vlgmr.msra.gmra.mrb[0].mxu1 %vm394_vm2, %v8021_v2  ;;  %v8025_v2 = vld [vmem:[#allocation7_spill] sm:$0xff] }
  0xfb   : > { %5678 = vmatmul.mubr.msk.f32.vlgmr.msra.gmra.mrb[0].mxu0 %vm394_vm2, %v8022_v15  ;;  %5456 = vmatprep.mubr.msk.f32.mxu1 %vm394_vm2, %v6668_v19  ;;  %v8026_v19 = vld [vmem:[#allocation8_spill] sm:$0xff] }
  0xfc   : > { %5898 = vmatpush3.bf16.msra.mxu0 %v6933_v25  ;;  %5680 = vmatprep.mubr.msk.f32.mxu0 %vm394_vm2, %v8023_v38  ;;  %v8029_v25 = vld [vmem:[#allocation11_spill] sm:$0xff] }
  0xfd   : > { %5900 = vmatprep.subr.bf16.mxu0 %v5899_v42 }
  0xfe   : > { %5457 = vmatmul.mubr.msk.f32.gmra.mrb[2].mxu1 %vm394_vm2, %v6683_v26  ;;  %v8027_v26 = vld [vmem:[#allocation9_spill] sm:$0xff] }
  0xff   : > { %5681 = vmatmul.mubr.msk.f32.gmra.mrb[2].mxu0 %vm394_vm2, %v8024_v8  ;;  %5459 = vmatprep.mubr.msk.f32.mxu1 %vm394_vm2, %v6689_v28  ;;  %v8028_v28 = vld [vmem:[#allocation10_spill] sm:$0xff] }
 0x100   : > { %5683 = vmatprep.mubr.msk.f32.mxu0 %vm394_vm2, %v8025_v2  ;;  %5902 = vmatpush3.bf16.msra.mxu0 %v5899_v42  ;;  %v4018_v2 = vld [vmem:[%s6312_s7 + $0x88] sm:$0xff] }
 0x102   : > { %5460 = vmatmul.mubr.msk.f32.gmra.mrb[4].mxu1 %vm394_vm2, %v6701_v30  ;;  %v8030_v30 = vld [vmem:[#allocation12_spill] sm:$0xff] }
 0x103   : > { %5684 = vmatmul.mubr.msk.f32.gmra.mrb[4].mxu0 %vm394_vm2, %v8026_v19  ;;  %5462 = vmatprep.mubr.msk.f32.mxu1 %vm394_vm2, %v6707_v34  ;;  %v8031_v34 = vld [vmem:[#allocation13_spill] sm:$0xff]  ;;  %v4019_v19 = vld [vmem:[%s6312_s7 + $0x90] sm:$0xff] }
 0x104   : > { %5686 = vmatprep.mubr.msk.f32.mxu0 %vm394_vm2, %v8027_v26 }
 0x106   : > { %5463 = vmatmul.mubr.msk.f32.gmra.mrb[6].mxu1 %vm394_vm2, %v6717_v36  ;;  %v8032_v36 = vld [vmem:[#allocation14_spill] sm:$0xff] }
 0x107   : > { %5687 = vmatmul.mubr.msk.f32.gmra.mrb[6].mxu0 %vm394_vm2, %v8028_v28  ;;  %5465 = vmatprep.mubr.msk.f32.mxu1 %vm394_vm2, %v6723_v48  ;;  %v8033_v48 = vld [vmem:[#allocation15_spill] sm:$0xff] }
 0x108   : > { %5689 = vmatprep.mubr.msk.f32.mxu0 %vm394_vm2, %v8029_v25  ;;  %v4020_v25 = vld [vmem:[%s6312_s7 + $0x98] sm:$0xff] }
 0x10a   : > { %5466 = vmatmul.mubr.msk.f32.gmra.mrb[8].mxu1 %vm394_vm2, %v6733_v1  ;;  %v8034_v1 = vld [vmem:[#allocation16_spill] sm:$0xff] }
 0x10b   : > { %5690 = vmatmul.mubr.msk.f32.gmra.mrb[8].mxu0 %vm394_vm2, %v8030_v30  ;;  %5468 = vmatprep.mubr.msk.f32.mxu1 %vm394_vm2, %v6739_v4  ;;  %v8035_v4 = vld [vmem:[#allocation17_spill] sm:$0xff] }
 0x10c   : > { %5692 = vmatprep.mubr.msk.f32.mxu0 %vm394_vm2, %v8031_v34  ;;  %v4021_v30 = vld [vmem:[%s6312_s7 + $0xa0] sm:$0xff] }
 0x10e   : > { %5469 = vmatmul.mubr.msk.f32.gmra.mrb[10].mxu1 %vm394_vm2, %v6749_v6  ;;  %v8036_v6 = vld [vmem:[#allocation18_spill] sm:$0xff] }
 0x10f   : > { %5693 = vmatmul.mubr.msk.f32.gmra.mrb[10].mxu0 %vm394_vm2, %v8032_v36  ;;  %5471 = vmatprep.mubr.msk.f32.mxu1 %vm394_vm2, %v6755_v11  ;;  %v8037_v11 = vld [vmem:[#allocation19_spill] sm:$0xff] }
 0x110   : > { %5695 = vmatprep.mubr.msk.f32.mxu0 %vm394_vm2, %v8033_v48  ;;  %v4022_v48 = vld [vmem:[%s6312_s7 + $0xa8] sm:$0xff] }
 0x112   : > { %5472 = vmatmul.mubr.msk.f32.gmra.mrb[12].mxu1 %vm394_vm2, %v6765_v13  ;;  %v8038_v13 = vld [vmem:[#allocation20_spill] sm:$0xff] }
 0x113   : > { %5696 = vmatmul.mubr.msk.f32.gmra.mrb[12].mxu0 %vm394_vm2, %v8034_v1  ;;  %5474 = vmatprep.mubr.msk.f32.mxu1 %vm394_vm2, %v6771_v16  ;;  %v8039_v16 = vld [vmem:[#allocation21_spill] sm:$0xff]  ;;  %v4023_v1 = vld [vmem:[%s6312_s7 + $0xb0] sm:$0xff] }
 0x114   : > { %5698 = vmatprep.mubr.msk.f32.mxu0 %vm394_vm2, %v8035_v4 }
 0x116   : > { %5475 = vmatmul.mubr.msk.f32.gmra.mrb[14].mxu1 %vm394_vm2, %v6781_v0  ;;  %v8040_v0 = vld [vmem:[#allocation22_spill] sm:$0xff] }
 0x117   : > { %5699 = vmatmul.mubr.msk.f32.gmra.mrb[14].mxu0 %vm394_vm2, %v8036_v6  ;;  %5477 = vmatprep.mubr.msk.f32.mxu1 %vm394_vm2, %v6787_v62  ;;  %v8041_v62 = vld [vmem:[#allocation23_spill] sm:$0xff] }
 0x118   : > { %5701 = vmatprep.mubr.msk.f32.mxu0 %vm394_vm2, %v8037_v11  ;;  %v4024_v11 = vld [vmem:[%s6312_s7 + $0xb8] sm:$0xff] }
 0x11a   : > { %5478 = vmatmul.mubr.msk.f32.gmra.mrb[16].mxu1 %vm394_vm2, %v6797_v60  ;;  %v8042_v60 = vld [vmem:[#allocation24_spill] sm:$0xff] }
 0x11b   : > { %5702 = vmatmul.mubr.msk.f32.gmra.mrb[16].mxu0 %vm394_vm2, %v8038_v13  ;;  %5480 = vmatprep.mubr.msk.f32.mxu1 %vm394_vm2, %v6803_v58  ;;  %v8043_v58 = vld [vmem:[#allocation25_spill] sm:$0xff] }
 0x11c   : > { %5704 = vmatprep.mubr.msk.f32.mxu0 %vm394_vm2, %v8039_v16  ;;  %v4025_v13 = vld [vmem:[%s6312_s7 + $0xc0] sm:$0xff] }
 0x11e   : > { %5481 = vmatmul.mubr.msk.f32.gmra.mrb[18].mxu1 %vm394_vm2, %v6813_v56  ;;  %v8044_v56 = vld [vmem:[#allocation26_spill] sm:$0xff] }
 0x11f   : > { %5705 = vmatmul.mubr.msk.f32.gmra.mrb[18].mxu0 %vm394_vm2, %v8040_v0  ;;  %5483 = vmatprep.mubr.msk.f32.mxu1 %vm394_vm2, %v6819_v54  ;;  %v8045_v54 = vld [vmem:[#allocation27_spill] sm:$0xff] }
 0x120   : > { %5707 = vmatprep.mubr.msk.f32.mxu0 %vm394_vm2, %v8041_v62  ;;  %v4026_v62 = vld [vmem:[%s6312_s7 + $0xc8] sm:$0xff] }
 0x122   : > { %5484 = vmatmul.mubr.msk.f32.gmra.mrb[20].mxu1 %vm394_vm2, %v6829_v52  ;;  %v8046_v52 = vld [vmem:[#allocation28_spill] sm:$0xff] }
 0x123   : > { %5708 = vmatmul.mubr.msk.f32.gmra.mrb[20].mxu0 %vm394_vm2, %v8042_v60  ;;  %5486 = vmatprep.mubr.msk.f32.mxu1 %vm394_vm2, %v6835_v50  ;;  %v8047_v50 = vld [vmem:[#allocation29_spill] sm:$0xff]  ;;  %v4027_v60 = vld [vmem:[%s6312_s7 + $0xd0] sm:$0xff] }
 0x124   : > { %5710 = vmatprep.mubr.msk.f32.mxu0 %vm394_vm2, %v8043_v58 }
 0x126   : > { %5487 = vmatmul.mubr.msk.f32.gmra.mrb[22].mxu1 %vm394_vm2, %v6845_v45  ;;  %v8048_v45 = vld [vmem:[#allocation30_spill] sm:$0xff] }
 0x127   : > { %5711 = vmatmul.mubr.msk.f32.gmra.mrb[22].mxu0 %vm394_vm2, %v8044_v56  ;;  %5489 = vmatprep.mubr.msk.f32.mxu1 %vm394_vm2, %v6851_v43  ;;  %v8049_v43 = vld [vmem:[#allocation31_spill] sm:$0xff] }
 0x128   : > { %5713 = vmatprep.mubr.msk.f32.mxu0 %vm394_vm2, %v8045_v54  ;;  %v4028_v54 = vld [vmem:[%s6312_s7 + $0xd8] sm:$0xff] }
 0x12a   : > { %5490 = vmatmul.mubr.msk.f32.gmra.mrb[24].mxu1 %vm394_vm2, %v6861_v41  ;;  %v3019_v41 = vld [vmem:[#allocation2 + $0x199] sm:$0xff] }
 0x12b   : > { %5714 = vmatmul.mubr.msk.f32.gmra.mrb[24].mxu0 %vm394_vm2, %v8046_v52  ;;  %5492 = vmatprep.mubr.msk.f32.mxu1 %vm394_vm2, %v6867_v39  ;;  %v8050_v39 = vld [vmem:[#allocation32_spill] sm:$0xff]  ;;  %v4029_v52 = vld [vmem:[%s6312_s7 + $0xe0] sm:$0xff] }
 0x12c   : > { %5716 = vmatprep.mubr.msk.f32.mxu0 %vm394_vm2, %v8047_v50 }
 0x12e   : > { %5493 = vmatmul.mubr.msk.f32.gmra.mrb[26].mxu1 %vm394_vm2, %v6877_v37  ;;  %v3020_v37 = vld [vmem:[#allocation2 + $0x1a1] sm:$0xff] }
 0x12f   : > { %5717 = vmatmul.mubr.msk.f32.gmra.mrb[26].mxu0 %vm394_vm2, %v8048_v45  ;;  %5495 = vmatprep.mubr.msk.f32.mxu1 %vm394_vm2, %v6883_v31  ;;  %v8051_v31 = vld [vmem:[#allocation35_spill] sm:$0xff] }
 0x130   : > { %5719 = vmatprep.mubr.msk.f32.mxu0 %vm394_vm2, %v8049_v43  ;;  %v4030_v43 = vld [vmem:[%s6312_s7 + $0xe8] sm:$0xff] }
 0x132   : > { %5496 = vmatmul.mubr.msk.f32.gmra.mrb[28].mxu1 %vm394_vm2, %v8014_v32  ;;  %v4013_v32 = vld [vmem:[%s6312_s7 + $0x60] sm:$0xff] }
 0x133   : > { %5720 = vmatmul.mubr.msk.f32.gmra.mrb[28].mxu0 %vm394_vm2, %v8050_v39  ;;  %5498 = vmatprep.mubr.msk.f32.mxu1 %vm394_vm2, %v7032_v24 }
 0x134   : > { %5722 = vmatprep.mubr.msk.f32.mxu0 %vm394_vm2, %v3019_v41  ;;  %v4031_v41 = vld [vmem:[%s6312_s7 + $0xf0] sm:$0xff] }
 0x136   : > { %5499 = vmatmul.mubr.msk.f32.gmra.mrb[30].mxu1 %vm394_vm2, %v7042_v40  ;;  %v4014_v40 = vld [vmem:[%s6312_s7 + $0x68] sm:$0xff] }
 0x137   : > { %5723 = vmatmul.mubr.msk.f32.gmra.mrb[30].mxu0 %vm394_vm2, %v3020_v37 }
 0x138   : > { %5733 = vmatprep.mubr.msk.f32.mxu0 %vm394_vm2, %v6642_v10  ;;  %v4002_v10 = vld [vmem:[%s6312_s7 + $0x8] sm:$0xff] }
 0x13b   : > { %5734 = vmatmul.mubr.msk.f32.vlgmr.msra.gmra.mrb[0].mxu0 %vm394_vm2, %v6666_v18  ;;  %v4003_v18 = vld [vmem:[%s6312_s7 + $0x10] sm:$0xff] }
 0x13c   : > { %5736 = vmatprep.mubr.msk.f32.mxu0 %vm394_vm2, %v6670_v21  ;;  %v4004_v21 = vld [vmem:[%s6312_s7 + $0x18] sm:$0xff] }
 0x13f   : > { %5737 = vmatmul.mubr.msk.f32.gmra.mrb[2].mxu0 %vm394_vm2, %v6687_v27  ;;  %v4005_v27 = vld [vmem:[%s6312_s7 + $0x20] sm:$0xff] }
 0x140   : > { %5739 = vmatprep.mubr.msk.f32.mxu0 %vm394_vm2, %v6691_v29  ;;  %v4006_v29 = vld [vmem:[%s6312_s7 + $0x28] sm:$0xff] }
 0x143   : > { %5740 = vmatmul.mubr.msk.f32.gmra.mrb[4].mxu0 %vm394_vm2, %v6705_v33  ;;  %v4007_v33 = vld [vmem:[%s6312_s7 + $0x30] sm:$0xff] }
 0x144   : > { %5742 = vmatprep.mubr.msk.f32.mxu0 %vm394_vm2, %v6709_v35  ;;  %v4008_v35 = vld [vmem:[%s6312_s7 + $0x38] sm:$0xff] }
 0x147   : > { %5743 = vmatmul.mubr.msk.f32.gmra.mrb[6].mxu0 %vm394_vm2, %v6721_v46 }
 0x148   : > { %5745 = vmatprep.mubr.msk.f32.mxu0 %vm394_vm2, %v6725_v49 }
 0x14b   : > { %5746 = vmatmul.mubr.msk.f32.gmra.mrb[8].mxu0 %vm394_vm2, %v6737_v3  ;;  %v4009_v3 = vld [vmem:[%s6312_s7 + $0x40] sm:$0xff] }
 0x14c   : > { %5748 = vmatprep.mubr.msk.f32.mxu0 %vm394_vm2, %v6741_v5  ;;  %v4010_v5 = vld [vmem:[%s6312_s7 + $0x48] sm:$0xff] }
 0x14f   : > { %5749 = vmatmul.mubr.msk.f32.gmra.mrb[10].mxu0 %vm394_vm2, %v6753_v7 }
 0x150   : > { %5751 = vmatprep.mubr.msk.f32.mxu0 %vm394_vm2, %v6757_v12 }
 0x153   : > { %5752 = vmatmul.mubr.msk.f32.gmra.mrb[12].mxu0 %vm394_vm2, %v6769_v14  ;;  %v4011_v14 = vld [vmem:[%s6312_s7 + $0x50] sm:$0xff] }
 0x154   : > { %5754 = vmatprep.mubr.msk.f32.mxu0 %vm394_vm2, %v6773_v17  ;;  %v4012_v17 = vld [vmem:[%s6312_s7 + $0x58] sm:$0xff] }
 0x157   : > { %5755 = vmatmul.mubr.msk.f32.gmra.mrb[14].mxu0 %vm394_vm2, %v6785_v63  ;;  %v4001_v63 = vld [vmem:[%s6312_s7] sm:$0xff] }
 0x158   : > { %5757 = vmatprep.mubr.msk.f32.mxu0 %vm394_vm2, %v6789_v61  ;;  %v4033_v61 = vld [vmem:[%s7920_s1] sm:$0xf]  ;;  %5783 = vmatprep.mubr.msk.f32.mxu1 %vm4034_vm4, %v4001_v63 }
 0x159   : > { %5781 = vmatprep.subr.msk.mxu1 %vm4131_vm3, %v4033_v61 }
 0x15a   : > { %5782 = vmatpush3.msk.msra.mxu1 %vm4131_vm3, %v4033_v61 }
 0x15b   : > { %5758 = vmatmul.mubr.msk.f32.gmra.mrb[16].mxu0 %vm394_vm2, %v6801_v59  ;;  %v8056_v59 = vld [vmem:[#allocation41_spill] sm:$0xff]  ;;  %5784 = vmatmul.mubr.msk.f32.vlgmr.msra.gmra.mrb[32].mxu1 %vm4034_vm4, %v4002_v10 }
 0x15c   : > { %5760 = vmatprep.mubr.msk.f32.mxu0 %vm394_vm2, %v6805_v57  ;;  %v8052_v57 = vld [vmem:[#allocation36_spill] sm:$0xff]  ;;  %5786 = vmatprep.mubr.msk.f32.mxu1 %vm4034_vm4, %v4003_v18 }
 0x15f   : > { %5761 = vmatmul.mubr.msk.f32.gmra.mrb[18].mxu0 %vm394_vm2, %v6817_v55  ;;  %v8053_v55 = vld [vmem:[#allocation37_spill] sm:$0xff]  ;;  %5787 = vmatmul.mubr.msk.f32.gmra.mrb[34].mxu1 %vm4034_vm4, %v4004_v21 }
 0x160   : > { %5763 = vmatprep.mubr.msk.f32.mxu0 %vm394_vm2, %v6821_v53  ;;  %v8054_v53 = vld [vmem:[#allocation38_spill] sm:$0xff]  ;;  %5789 = vmatprep.mubr.msk.f32.mxu1 %vm4034_vm4, %v4005_v27 }
 0x163   : > { %5764 = vmatmul.mubr.msk.f32.gmra.mrb[20].mxu0 %vm394_vm2, %v6833_v51  ;;  %v8055_v51 = vld [vmem:[#allocation39_spill] sm:$0xff]  ;;  %5790 = vmatmul.mubr.msk.f32.gmra.mrb[36].mxu1 %vm4034_vm4, %v4006_v29 }
 0x164   : > { %5766 = vmatprep.mubr.msk.f32.mxu0 %vm394_vm2, %v6837_v47  ;;  %v3409_v47 = vld [vmem:[#allocation2 + $0x19a] sm:$0xff]  ;;  %5792 = vmatprep.mubr.msk.f32.mxu1 %vm4034_vm4, %v4007_v33 }
 0x167   : > { %5767 = vmatmul.mubr.msk.f32.gmra.mrb[22].mxu0 %vm394_vm2, %v6849_v44  ;;  %v3410_v44 = vld [vmem:[#allocation2 + $0x1a2] sm:$0xff]  ;;  %5793 = vmatmul.mubr.msk.f32.gmra.mrb[38].mxu1 %vm4034_vm4, %v4008_v35 }
 0x168   : > { %5769 = vmatprep.mubr.msk.f32.mxu0 %vm394_vm2, %v8051_v31  ;;  %5795 = vmatprep.mubr.msk.f32.mxu1 %vm4034_vm4, %v4009_v3  ;;  %v4032_v31 = vld [vmem:[%s6312_s7 + $0xf8] sm:$0xff] }
 0x16b   : > { %5770 = vmatmul.mubr.msk.f32.gmra.mrb[24].mxu0 %vm394_vm2, %v8052_v57  ;;  %5796 = vmatmul.mubr.msk.f32.gmra.mrb[40].mxu1 %vm4034_vm4, %v4010_v5 }
 0x16c   : > { %5772 = vmatprep.mubr.msk.f32.mxu0 %vm394_vm2, %v8053_v55  ;;  %5798 = vmatprep.mubr.msk.f32.mxu1 %vm4034_vm4, %v4011_v14 }
 0x16f   : > { %5773 = vmatmul.mubr.msk.f32.gmra.mrb[26].mxu0 %vm394_vm2, %v8054_v53  ;;  %5799 = vmatmul.mubr.msk.f32.gmra.mrb[42].mxu1 %vm4034_vm4, %v4012_v17 }
 0x170   : > { %5775 = vmatprep.mubr.msk.f32.mxu0 %vm394_vm2, %v8055_v51  ;;  %5801 = vmatprep.mubr.msk.f32.mxu1 %vm4034_vm4, %v4013_v32 }
 0x173   : > { %5776 = vmatmul.mubr.msk.f32.gmra.mrb[28].mxu0 %vm394_vm2, %v8056_v59  ;;  %5802 = vmatmul.mubr.msk.f32.gmra.mrb[44].mxu1 %vm4034_vm4, %v4014_v40 }
 0x174   : > { %5778 = vmatprep.mubr.msk.f32.mxu0 %vm394_vm2, %v3409_v47  ;;  %5804 = vmatprep.mubr.msk.f32.mxu1 %vm4034_vm4, %v4015_v9 }
 0x177   : > { %5779 = vmatmul.mubr.msk.f32.gmra.mrb[30].mxu0 %vm394_vm2, %v3410_v44  ;;  %5805 = vmatmul.mubr.msk.f32.gmra.mrb[46].mxu1 %vm4034_vm4, %v4016_v23 }
 0x178   : > { %5807 = vmatprep.mubr.msk.f32.mxu1 %vm4034_vm4, %v4017_v20 }
 0x17b   : > { %5808 = vmatmul.mubr.msk.f32.gmra.mrb[48].mxu1 %vm4034_vm4, %v4018_v2 }
 0x17c   : > { %5810 = vmatprep.mubr.msk.f32.mxu1 %vm4034_vm4, %v4019_v19 }
 0x17f   : > { %5811 = vmatmul.mubr.msk.f32.gmra.mrb[50].mxu1 %vm4034_vm4, %v4020_v25 }
 0x180   : > { %5813 = vmatprep.mubr.msk.f32.mxu1 %vm4034_vm4, %v4021_v30 }
 0x183   : > { %5814 = vmatmul.mubr.msk.f32.gmra.mrb[52].mxu1 %vm4034_vm4, %v4022_v48 }
 0x184   : > { %5816 = vmatprep.mubr.msk.f32.mxu1 %vm4034_vm4, %v4023_v1 }
 0x187   : > { %5817 = vmatmul.mubr.msk.f32.gmra.mrb[54].mxu1 %vm4034_vm4, %v4024_v11 }
 0x188   : > { %5819 = vmatprep.mubr.msk.f32.mxu1 %vm4034_vm4, %v4025_v13 }
 0x18b   : > { %5820 = vmatmul.mubr.msk.f32.gmra.mrb[56].mxu1 %vm4034_vm4, %v4026_v62 }
 0x18c   : > { %5822 = vmatprep.mubr.msk.f32.mxu1 %vm4034_vm4, %v4027_v60 }
 0x18f   : > { %5823 = vmatmul.mubr.msk.f32.gmra.mrb[58].mxu1 %vm4034_vm4, %v4028_v54 }
 0x190   : > { %5825 = vmatprep.mubr.msk.f32.mxu1 %vm4034_vm4, %v4029_v52 }
 0x193   : > { %5826 = vmatmul.mubr.msk.f32.gmra.mrb[60].mxu1 %vm4034_vm4, %v4030_v43 }
 0x194   : > { %5828 = vmatprep.mubr.msk.f32.mxu1 %vm4034_vm4, %v4031_v41 }
 0x197   : > { %5829 = vmatmul.mubr.msk.f32.gmra.mrb[62].mxu1 %vm4034_vm4, %v4032_v31 }
 0x1cd   : > { %v7267_v46 = vpop.f32.mrb[0].mxu1 }
 0x1ce   : > { %v7270_v49 = vpop.f32.mrb[1].mxu1 }
 0x1d1   : > { %v7275_v7 = vpop.f32.mrb[2].mxu1 }
 0x1d2   : > { %v7278_v12 = vpop.f32.mrb[3].mxu1 }
 0x1d5   : > { %v7283_v24 = vpop.f32.mrb[4].mxu1 }
 0x1d6   : > { %v7287_v38 = vpop.f32.mrb[5].mxu1 }
 0x1d9   : > { %v7292_v15 = vpop.f32.mrb[6].mxu1 }
 0x1da   : > { %v7295_v22 = vpop.f32.mrb[7].mxu1 }
 0x1dd   : > { %v7300_v42 = vpop.f32.mrb[8].mxu1 }
 0x1de   : > { %v7303_v8 = vpop.f32.mrb[9].mxu1 }
 0x1e1   : > { %v7308_v26 = vpop.f32.mrb[10].mxu1 }
 0x1e2   : > { %v7311_v28 = vpop.f32.mrb[11].mxu1 }
 0x1e5   : > { %v7316_v34 = vpop.f32.mrb[12].mxu1 }
 0x1e6   : > { %v7319_v36 = vpop.f32.mrb[13].mxu1 }
 0x1e9   : > { %v7324_v4 = vpop.f32.mrb[14].mxu1 }
 0x1ea   : > { %v7327_v6 = vpop.f32.mrb[15].mxu1 }
 0x1ed   : > { %v7332_v16 = vpop.f32.mrb[16].mxu1 }
 0x1ee   : > { %v7335_v0 = vpop.f32.mrb[17].mxu1 }
 0x1f1   : > { %v7340_v58 = vpop.f32.mrb[18].mxu1 }
 0x1f2   : > { %v7343_v56 = vpop.f32.mrb[19].mxu1 }
 0x1f5   : > { %v7348_v50 = vpop.f32.mrb[20].mxu1 }
 0x1f6   : > { %v7351_v45 = vpop.f32.mrb[21].mxu1 }
 0x1f9   : > { %v7356_v39 = vpop.f32.mrb[22].mxu1 }
 0x1fa   : > { %v7359_v37 = vpop.f32.mrb[23].mxu1 }
 0x1fd   : > { %v7363_v57 = vpop.f32.mrb[24].mxu1 }
 0x1fe   : > { %v7366_v55 = vpop.f32.mrb[25].mxu1 }
 0x201   : > { %v7368_v53 = vpop.f32.mrb[26].mxu1 }
 0x202   : > { %v7370_v51 = vpop.f32.mrb[27].mxu1 }
 0x205   : > { %v7372_v47 = vpop.f32.mrb[28].mxu1 }
 0x206   : > { %v7374_v59 = vpop.f32.mrb[29].mxu1 }
 0x209   : > { %v7376_v44 = vpop.f32.mrb[30].mxu1 }
 0x20a   : > { %v7378_v61 = vpop.f32.mrb[31].mxu1 }
 0x20e   : > { %v5735_v63 = vpop.f32.mrb[0].mxu0 }
 0x20f   : > { %v7381_v10 = vadd.f32 %v5735_v63, %v7267_v46  ;;  %v3578_v18 = vpop.f32.mrb[1].mxu0 }
 0x210   : > { %v7384_v21 = vadd.f32 %v3578_v18, %v7270_v49 }
 0x211   : > { %v3770_v27 = vmul.f32 %v7381_v10, %v7381_v10 }
 0x212   : > { %v3769_v29 = vmul.f32 %v7384_v21, %v7384_v21  ;;  %v5738_v33 = vpop.f32.mrb[2].mxu0 }
 0x213   : > { %v7391_v35 = vadd.f32 %v5738_v33, %v7275_v7  ;;  %v3588_v3 = vpop.f32.mrb[3].mxu0  ;;  %v3802_v5 = vsel %vm394_vm2, %v3770_v27, 0.0 }
 0x214   : > { %v3801_v46 = vsel %vm394_vm2, %v3769_v29, 0.0  ;;  %v7396_v14 = vadd.f32 %v3588_v3, %v7278_v12 }
 0x215   : > { %v3772_v49 = vmul.f32 %v7391_v35, %v7391_v35  ;;  %v3803_v40 = vadd.f32 %v3802_v5, %v3801_v46 }
 0x216   : > { %v3771_v17 = vmul.f32 %v7396_v14, %v7396_v14  ;;  %v5741_v32 = vpop.f32.mrb[4].mxu0 }
 0x217   : > { %v7403_v9 = vadd.f32 %v5741_v32, %v7283_v24  ;;  %v3598_v7 = vpop.f32.mrb[5].mxu0  ;;  %v3806_v12 = vsel %vm394_vm2, %v3772_v49, 0.0 }
 0x218   : > { %v3804_v23 = vsel %vm394_vm2, %v3771_v17, 0.0  ;;  %v7407_v20 = vadd.f32 %v3598_v7, %v7287_v38 }
 0x219   : > { %v3805_v2 = vadd.f32 %v3804_v23, %v3803_v40  ;;  %v3774_v19 = vmul.f32 %v7403_v9, %v7403_v9 }
 0x21a   : > { %v3773_v25 = vmul.f32 %v7407_v20, %v7407_v20  ;;  %v5744_v30 = vpop.f32.mrb[6].mxu0 }
 0x21b   : > { %v3807_v48 = vadd.f32 %v3806_v12, %v3805_v2  ;;  %v7415_v24 = vadd.f32 %v5744_v30, %v7292_v15  ;;  %v3608_v1 = vpop.f32.mrb[7].mxu0  ;;  %v3810_v62 = vsel %vm394_vm2, %v3774_v19, 0.0 }
 0x21c   : > { %v3808_v11 = vsel %vm394_vm2, %v3773_v25, 0.0  ;;  %v7419_v38 = vadd.f32 %v3608_v1, %v7295_v22 }
 0x21d   : > { %v3809_v13 = vadd.f32 %v3808_v11, %v3807_v48  ;;  %v3776_v60 = vmul.f32 %v7415_v24, %v7415_v24 }
 0x21e   : > { %v3775_v54 = vmul.f32 %v7419_v38, %v7419_v38  ;;  %v5747_v52 = vpop.f32.mrb[8].mxu0 }
 0x21f   : > { %v3811_v43 = vadd.f32 %v3810_v62, %v3809_v13  ;;  %v7427_v15 = vadd.f32 %v5747_v52, %v7300_v42  ;;  %v3618_v41 = vpop.f32.mrb[9].mxu0  ;;  %v3814_v18 = vsel %vm394_vm2, %v3776_v60, 0.0 }
 0x220   : > { %v3812_v31 = vsel %vm394_vm2, %v3775_v54, 0.0  ;;  %v7431_v22 = vadd.f32 %v3618_v41, %v7303_v8 }
 0x221   : > { %v3813_v63 = vadd.f32 %v3812_v31, %v3811_v43  ;;  %v3778_v27 = vmul.f32 %v7427_v15, %v7427_v15 }
 0x222   : > { %v3777_v29 = vmul.f32 %v7431_v22, %v7431_v22  ;;  %v5750_v33 = vpop.f32.mrb[10].mxu0 }
 0x223   : > { %v3815_v3 = vadd.f32 %v3814_v18, %v3813_v63  ;;  %v7439_v42 = vadd.f32 %v5750_v33, %v7308_v26  ;;  %v3628_v5 = vpop.f32.mrb[11].mxu0  ;;  %v3818_v17 = vsel %vm394_vm2, %v3778_v27, 0.0 }
 0x224   : > { %v3816_v46 = vsel %vm394_vm2, %v3777_v29, 0.0  ;;  %v7443_v8 = vadd.f32 %v3628_v5, %v7311_v28 }
 0x225   : > { %v3817_v49 = vadd.f32 %v3816_v46, %v3815_v3  ;;  %v3780_v32 = vmul.f32 %v7439_v42, %v7439_v42 }
 0x226   : > { %v3779_v40 = vmul.f32 %v7443_v8, %v7443_v8  ;;  %v5753_v7 = vpop.f32.mrb[12].mxu0 }
 0x227   : > { %v3819_v23 = vadd.f32 %v3818_v17, %v3817_v49  ;;  %v7451_v26 = vadd.f32 %v5753_v7, %v7316_v34  ;;  %v3638_v2 = vpop.f32.mrb[13].mxu0  ;;  %v3822_v25 = vsel %vm394_vm2, %v3780_v32, 0.0 }
 0x228   : > { %v3820_v12 = vsel %vm394_vm2, %v3779_v40, 0.0  ;;  %v7455_v28 = vadd.f32 %v3638_v2, %v7319_v36 }
 0x229   : > { %v3821_v19 = vadd.f32 %v3820_v12, %v3819_v23  ;;  %v3782_v30 = vmul.f32 %v7451_v26, %v7451_v26 }
 0x22a   : > { %v3781_v48 = vmul.f32 %v7455_v28, %v7455_v28  ;;  %v5756_v1 = vpop.f32.mrb[14].mxu0 }
 0x22b   : > { %v3823_v11 = vadd.f32 %v3822_v25, %v3821_v19  ;;  %v7463_v34 = vadd.f32 %v5756_v1, %v7324_v4  ;;  %v3648_v13 = vpop.f32.mrb[15].mxu0  ;;  %v3826_v54 = vsel %vm394_vm2, %v3782_v30, 0.0 }
 0x22c   : > { %v3824_v62 = vsel %vm394_vm2, %v3781_v48, 0.0  ;;  %v7467_v36 = vadd.f32 %v3648_v13, %v7327_v6 }
 0x22d   : > { %v3825_v60 = vadd.f32 %v3824_v62, %v3823_v11  ;;  %v3784_v52 = vmul.f32 %v7463_v34, %v7463_v34 }
 0x22e   : > { %v3783_v43 = vmul.f32 %v7467_v36, %v7467_v36  ;;  %v5759_v41 = vpop.f32.mrb[16].mxu0 }
 0x22f   : > { %v3827_v31 = vadd.f32 %v3826_v54, %v3825_v60  ;;  %v7475_v4 = vadd.f32 %v5759_v41, %v7332_v16  ;;  %v3658_v63 = vpop.f32.mrb[17].mxu0  ;;  %v3830_v29 = vsel %vm394_vm2, %v3784_v52, 0.0 }
 0x230   : > { %v3828_v18 = vsel %vm394_vm2, %v3783_v43, 0.0  ;;  %v7479_v6 = vadd.f32 %v3658_v63, %v7335_v0 }
 0x231   : > { %v3829_v27 = vadd.f32 %v3828_v18, %v3827_v31  ;;  %v3786_v33 = vmul.f32 %v7475_v4, %v7475_v4 }
 0x232   : > { %v3785_v3 = vmul.f32 %v7479_v6, %v7479_v6  ;;  %v5762_v5 = vpop.f32.mrb[18].mxu0 }
 0x233   : > { %v3831_v46 = vadd.f32 %v3830_v29, %v3829_v27  ;;  %v7487_v16 = vadd.f32 %v5762_v5, %v7340_v58  ;;  %v3668_v49 = vpop.f32.mrb[19].mxu0  ;;  %v3834_v40 = vsel %vm394_vm2, %v3786_v33, 0.0 }
 0x234   : > { %v3832_v17 = vsel %vm394_vm2, %v3785_v3, 0.0  ;;  %v7491_v0 = vadd.f32 %v3668_v49, %v7343_v56 }
 0x235   : > { %v3833_v32 = vadd.f32 %v3832_v17, %v3831_v46  ;;  %v3788_v7 = vmul.f32 %v7487_v16, %v7487_v16 }
 0x236   : > { %v3787_v23 = vmul.f32 %v7491_v0, %v7491_v0  ;;  %v5765_v2 = vpop.f32.mrb[20].mxu0 }
 0x237   : > { %v3835_v12 = vadd.f32 %v3834_v40, %v3833_v32  ;;  %v7499_v58 = vadd.f32 %v5765_v2, %v7348_v50  ;;  %v3678_v19 = vpop.f32.mrb[21].mxu0  ;;  %v3838_v48 = vsel %vm394_vm2, %v3788_v7, 0.0 }
 0x238   : > { %v3836_v25 = vsel %vm394_vm2, %v3787_v23, 0.0  ;;  %v7503_v56 = vadd.f32 %v3678_v19, %v7351_v45 }
 0x239   : > { %v3837_v30 = vadd.f32 %v3836_v25, %v3835_v12  ;;  %v3790_v1 = vmul.f32 %v7499_v58, %v7499_v58 }
 0x23a   : > { %v3789_v11 = vmul.f32 %v7503_v56, %v7503_v56  ;;  %v5768_v13 = vpop.f32.mrb[22].mxu0 }
 0x23b   : > { %v3839_v62 = vadd.f32 %v3838_v48, %v3837_v30  ;;  %v7511_v50 = vadd.f32 %v5768_v13, %v7356_v39  ;;  %v3688_v60 = vpop.f32.mrb[23].mxu0  ;;  %v3842_v43 = vsel %vm394_vm2, %v3790_v1, 0.0 }
 0x23c   : > { %v3840_v54 = vsel %vm394_vm2, %v3789_v11, 0.0  ;;  %v7515_v45 = vadd.f32 %v3688_v60, %v7359_v37 }
 0x23d   : > { %v3841_v52 = vadd.f32 %v3840_v54, %v3839_v62  ;;  %v3792_v41 = vmul.f32 %v7511_v50, %v7511_v50 }
 0x23e   : > { %v3791_v31 = vmul.f32 %v7515_v45, %v7515_v45  ;;  %v5771_v63 = vpop.f32.mrb[24].mxu0 }
 0x23f   : > { %v3843_v18 = vadd.f32 %v3842_v43, %v3841_v52  ;;  %v7523_v39 = vadd.f32 %v5771_v63, %v7363_v57  ;;  %v3698_v27 = vpop.f32.mrb[25].mxu0  ;;  %v3846_v3 = vsel %vm394_vm2, %v3792_v41, 0.0 }
 0x240   : > { %v3844_v29 = vsel %vm394_vm2, %v3791_v31, 0.0  ;;  %v7527_v37 = vadd.f32 %v3698_v27, %v7366_v55 }
 0x241   : > { %v3845_v33 = vadd.f32 %v3844_v29, %v3843_v18  ;;  %v3794_v5 = vmul.f32 %v7523_v39, %v7523_v39 }
 0x242   : > { %v3793_v46 = vmul.f32 %v7527_v37, %v7527_v37  ;;  %v5774_v49 = vpop.f32.mrb[26].mxu0 }
 0x243   : > { %v3847_v17 = vadd.f32 %v3846_v3, %v3845_v33  ;;  %v7535_v57 = vadd.f32 %v5774_v49, %v7368_v53  ;;  %v3708_v32 = vpop.f32.mrb[27].mxu0  ;;  %v3850_v23 = vsel %vm394_vm2, %v3794_v5, 0.0  ;;  %v7572_v5 = vpop.f32.mrb[32].mxu1 }
 0x244   : > { %v3848_v40 = vsel %vm394_vm2, %v3793_v46, 0.0  ;;  %v7539_v55 = vadd.f32 %v3708_v32, %v7370_v51 }
 0x245   : > { %8057 = vst [vmem:[#allocation40_spill] sm:$0xff] %v7535_v57  ;;  %v3849_v7 = vadd.f32 %v3848_v40, %v3847_v17  ;;  %v3796_v2 = vmul.f32 %v7535_v57, %v7535_v57 }
 0x246   : > { %8058 = vst [vmem:[#allocation33_spill] sm:$0xff] %v7539_v55  ;;  %v3795_v12 = vmul.f32 %v7539_v55, %v7539_v55  ;;  %v5777_v19 = vpop.f32.mrb[28].mxu0 }
 0x247   : > { %v3851_v25 = vadd.f32 %v3850_v23, %v3849_v7  ;;  %v7547_v53 = vadd.f32 %v5777_v19, %v7372_v47  ;;  %v3718_v30 = vpop.f32.mrb[29].mxu0  ;;  %v3854_v11 = vsel %vm394_vm2, %v3796_v2, 0.0 }
 0x248   : > { %v3852_v48 = vsel %vm394_vm2, %v3795_v12, 0.0  ;;  %v7551_v51 = vadd.f32 %v3718_v30, %v7374_v59 }
 0x249   : > { %8059 = vst [vmem:[#allocation3_spill] sm:$0xff] %v7547_v53  ;;  %v3853_v1 = vadd.f32 %v3852_v48, %v3851_v25  ;;  %v3798_v13 = vmul.f32 %v7547_v53, %v7547_v53 }
 0x24a   : > { %8060 = vst [vmem:[#allocation34_spill] sm:$0xff] %v7551_v51  ;;  %v3797_v62 = vmul.f32 %v7551_v51, %v7551_v51  ;;  %v5780_v60 = vpop.f32.mrb[30].mxu0 }
 0x24b   : > { %v3855_v54 = vadd.f32 %v3854_v11, %v3853_v1  ;;  %v7559_v47 = vadd.f32 %v5780_v60, %v7376_v44  ;;  %v3728_v52 = vpop.f32.mrb[31].mxu0  ;;  %v3858_v31 = vsel %vm394_vm2, %v3798_v13, 0.0 }
 0x24c   : > { %v3856_v43 = vsel %vm394_vm2, %v3797_v62, 0.0  ;;  %v7563_v59 = vadd.f32 %v3728_v52, %v7378_v61  ;;  %v7574_v61 = vpop.f32.mrb[33].mxu1 }
 0x24d   : > { %8061 = vst [vmem:[#allocation4_spill] sm:$0xff] %v7559_v47  ;;  %v3857_v41 = vadd.f32 %v3856_v43, %v3855_v54  ;;  %v3800_v63 = vmul.f32 %v7559_v47, %v7559_v47  ;;  %v7576_v46 = vpop.f32.mrb[34].mxu1 }
 0x24e   : > { %8062 = vst [vmem:[#allocation5_spill] sm:$0xff] %v7563_v59  ;;  %v3799_v18 = vmul.f32 %v7563_v59, %v7563_v59  ;;  %v7578_v49 = vpop.f32.mrb[35].mxu1 }
 0x24f   : > { %v3859_v27 = vadd.f32 %v3858_v31, %v3857_v41  ;;  %v3862_v33 = vsel %vm394_vm2, %v3800_v63, 0.0  ;;  %v7580_v17 = vpop.f32.mrb[36].mxu1 }
 0x250   : > { %v3860_v29 = vsel %vm394_vm2, %v3799_v18, 0.0  ;;  %v7582_v32 = vpop.f32.mrb[37].mxu1 }
 0x251   : > { %v3861_v44 = vadd.f32 %v3860_v29, %v3859_v27  ;;  %v7584_v40 = vpop.f32.mrb[38].mxu1 }
 0x252   : > { %v7586_v7 = vpop.f32.mrb[39].mxu1 }
 0x253   : > { %v3863_v3 = vadd.f32 %v3862_v33, %v3861_v44  ;;  %v7588_v23 = vpop.f32.mrb[40].mxu1 }
 0x254   : > { %v7590_v2 = vpop.f32.mrb[41].mxu1 }
 0x255   : > { %3864 = vadd.xlane.f32.xlu0 %v3863_v3  ;;  %v7592_v12 = vpop.f32.mrb[42].mxu1 }
 0x256   : > { %v7594_v19 = vpop.f32.mrb[43].mxu1 }
 0x257   : > { %v7596_v25 = vpop.f32.mrb[44].mxu1 }
 0x258   : > { %v7598_v30 = vpop.f32.mrb[45].mxu1 }
 0x259   : > { %v7600_v48 = vpop.f32.mrb[46].mxu1 }
 0x25a   : > { %v7602_v1 = vpop.f32.mrb[47].mxu1 }
 0x25b   : > { %v7604_v11 = vpop.f32.mrb[48].mxu1 }
 0x25c   : > { %v7606_v13 = vpop.f32.mrb[49].mxu1 }
 0x25d   : > { %v7608_v62 = vpop.f32.mrb[50].mxu1 }
 0x25e   : > { %v7610_v60 = vpop.f32.mrb[51].mxu1 }
 0x25f   : > { %v7612_v54 = vpop.f32.mrb[52].mxu1 }
 0x260   : > { %v7614_v52 = vpop.f32.mrb[53].mxu1 }
 0x261   : > { %v7616_v43 = vpop.f32.mrb[54].mxu1 }
 0x262   : > { %v7618_v41 = vpop.f32.mrb[55].mxu1 }
 0x263   : > { %v7620_v63 = vpop.f32.mrb[56].mxu1 }
 0x264   : > { %8063 = vst [vmem:[#allocation6_spill] sm:$0xff] %v7620_v63  ;;  %v7622_v27 = vpop.f32.mrb[57].mxu1 }
 0x265   : > { %8064 = vst [vmem:[#allocation7_spill] sm:$0xff] %v7622_v27  ;;  %v7624_v44 = vpop.f32.mrb[58].mxu1 }
 0x266   : > { %8065 = vst [vmem:[#allocation8_spill] sm:$0xff] %v7624_v44  ;;  %v7626_v3 = vpop.f32.mrb[59].mxu1 }
 0x267   : > { %8066 = vst [vmem:[#allocation9_spill] sm:$0xff] %v7626_v3  ;;  %v7628_v51 = vpop.f32.mrb[60].mxu1 }
 0x268   : > { %8067 = vst [vmem:[#allocation10_spill] sm:$0xff] %v7628_v51  ;;  %v7630_v53 = vpop.f32.mrb[61].mxu1 }
 0x26a   : > { %v7632_v57 = vpop.f32.mrb[62].mxu1 }
 0x26b   : > { %8068 = vst [vmem:[#allocation11_spill] sm:$0xff] %v7632_v57  ;;  %v7634_v63 = vpop.f32.mrb[63].mxu1 }
 0x26c   : > { %8069 = vst [vmem:[#allocation12_spill] sm:$0xff] %v7634_v63 }
 0x2e2   : > { %v3865_v31 = vpop.xlane.xlu0 %3864 }
 0x2e3   : > { %v3866_v18 = vrot.slane %v3865_v31, 4 }
 0x2e5   : > { %v3867_v29 = vadd.f32 %v3866_v18, %v3865_v31 }
 0x2e7   : > { %v3868_v33 = vrot.slane %v3867_v29, 2 }
 0x2e9   : > { %v3869_v59 = vadd.f32 %v3868_v33, %v3867_v29 }
 0x2eb   : > { %v3870_v47 = vrot.slane %v3869_v59, 1 }
 0x2ed   : > { %v3871_v55 = vadd.f32 %v3870_v47, %v3869_v59 }
 0x2ef   : > { %6159 = vpush %v3871_v55 }
 0x320   : > { %s6160_s7 = spop %6159 }
 0x321   : > { %v3873_v27 = vstv %s6160_s7 }
 0x322   : > { %6202 = vrsqrt.f32 %v3873_v27  ;;  %vm3876_vm5 = vcmp.eq.f32.partialorder %v3873_v27, inf  ;;  %v3879_v44 = vand.u32 2147483648, %v3873_v27  ;;  %vm3878_vm6 = vcmp.eq.f32.partialorder %v3873_v27, 0.0 }
 0x32c   : > { %v6203_v31 = vpop.eup %6202 }
 0x32d   : > { %v3875_v18 = vmul.f32 %v6203_v31, %v3873_v27  ;;  %v7641_v31 = vld [vmem:[%s7922_s3] ss:$0 sm:$0xff] }
 0x32f   : > { %v3877_v3 = vsel %vm3876_vm5, %v3873_v27, %v3875_v18 }
 0x330   : > { %v3880_v29 = vsel %vm3878_vm6, %v3879_v44, %v3877_v3 }
 0x331   : > { %6204 = vrsqrt.f32 %v3880_v29  ;;  %vm3883_vm7 = vcmp.eq.f32.partialorder %v3880_v29, inf  ;;  %v3886_v47 = vand.u32 2147483648, %v3880_v29  ;;  %vm3885_vm8 = vcmp.eq.f32.partialorder %v3880_v29, 0.0 }
 0x33b   : > { %v6205_v33 = vpop.eup %6204 }
 0x33c   : > { %v3882_v51 = vmul.f32 %v6205_v33, %v3880_v29 }
 0x33e   : > { %v3884_v55 = vsel %vm3883_vm7, %v3880_v29, %v3882_v51 }
 0x33f   : > { %v3887_v59 = vsel %vm3885_vm8, %v3886_v47, %v3884_v55 }
 0x340   : > { %v3888_v57 = vmax.f32 %v3887_v59, 0.0001 }
 0x342   : > { %6206 = vrcp.f32 %v3888_v57 }
 0x34c   : > { %v7636_v63 = vpop.eup %6206 }
 0x34d   : > { %v3891_v27 = vmul.f32 %v7636_v63, %v7384_v21  ;;  %v3892_v44 = vmul.f32 %v7636_v63, %v7381_v10  ;;  %v3893_v51 = vmul.f32 %v7636_v63, %v7396_v14  ;;  %v3894_v3 = vmul.f32 %v7636_v63, %v7391_v35  ;;  %v7660_v21 = vld [vmem:[%s7923_s4] ss:$0 sm:$0xff] }
 0x34e   : > { %v3895_v57 = vmul.f32 %v7636_v63, %v7407_v20  ;;  %v3896_v18 = vmul.f32 %v7636_v63, %v7403_v9  ;;  %v3898_v29 = vmul.f32 %v7636_v63, %v7415_v24  ;;  %v3897_v10 = vmul.f32 %v7636_v63, %v7419_v38 }
 0x34f   : > { %v3930_v14 = vmul.f32 %v7641_v31, %v3891_v27  ;;  %v3931_v35 = vmul.f32 %v7641_v31, %v3892_v44  ;;  %v3932_v20 = vmul.f32 %v7641_v31, %v3893_v51  ;;  %v3933_v33 = vmul.f32 %v7641_v31, %v3894_v3 }
 0x350   : > { %v3934_v9 = vmul.f32 %v7641_v31, %v3895_v57  ;;  %v3935_v24 = vmul.f32 %v7641_v31, %v3896_v18  ;;  %v3937_v47 = vmul.f32 %v7641_v31, %v3898_v29  ;;  %v3936_v55 = vmul.f32 %v7641_v31, %v3897_v10 }
 0x351   : > { %v3969_v59 = vadd.f32 %v7660_v21, %v3930_v14  ;;  %v3970_v38 = vadd.f32 %v7660_v21, %v3931_v35  ;;  %v3971_v27 = vadd.f32 %v7660_v21, %v3932_v20  ;;  %v3972_v44 = vadd.f32 %v7660_v21, %v3933_v33 }
 0x352   : > { %v3973_v51 = vadd.f32 %v7660_v21, %v3934_v9  ;;  %v3974_v3 = vadd.f32 %v7660_v21, %v3935_v24  ;;  %v3976_v57 = vadd.f32 %v7660_v21, %v3937_v47  ;;  %v3975_v18 = vadd.f32 %v7660_v21, %v3936_v55 }
 0x353   : > { %v4202_v29 = vadd.f32 %v7574_v61, %v3969_v59  ;;  %v4207_v10 = vadd.f32 %v7572_v5, %v3970_v38  ;;  %v4212_v14 = vadd.f32 %v7578_v49, %v3971_v27  ;;  %v4217_v35 = vadd.f32 %v7576_v46, %v3972_v44 }
 0x354   : > { %v4222_v20 = vadd.f32 %v7582_v32, %v3973_v51  ;;  %v4227_v33 = vadd.f32 %v7580_v17, %v3974_v3  ;;  %v4237_v9 = vadd.f32 %v7584_v40, %v3976_v57  ;;  %v4232_v24 = vadd.f32 %v7586_v7, %v3975_v18 }
 0x355   : > { %v4360_v47 = vmax.f32 %v4202_v29, 0.0  ;;  %v4361_v61 = vmax.f32 %v4207_v10, 0.0  ;;  %v4362_v55 = vmax.f32 %v4212_v14, 0.0  ;;  %v4363_v59 = vmax.f32 %v4217_v35, 0.0 }
 0x356   : > { %v4364_v5 = vmax.f32 %v4222_v20, 0.0  ;;  %v4365_v38 = vmax.f32 %v4227_v33, 0.0  ;;  %v4367_v49 = vmax.f32 %v4237_v9, 0.0  ;;  %v4366_v46 = vmax.f32 %v4232_v24, 0.0 }
 0x357   : > { %4392 = vst.msk [vmem:[%s6317_s10] sm:$0xff] %vm394_vm2, %v4360_v47  ;;  %4393 = vst.msk [vmem:[%s6317_s10 + $0x8] sm:$0xff] %vm394_vm2, %v4361_v61  ;;  %v3900_v17 = vmul.f32 %v7636_v63, %v7427_v15  ;;  %v3899_v32 = vmul.f32 %v7636_v63, %v7431_v22  ;;  %v3902_v40 = vmul.f32 %v7636_v63, %v7439_v42 }
 0x358   : > { %4394 = vst.msk [vmem:[%s6317_s10 + $0x10] sm:$0xff] %vm394_vm2, %v4362_v55  ;;  %4395 = vst.msk [vmem:[%s6317_s10 + $0x18] sm:$0xff] %vm394_vm2, %v4363_v59  ;;  %v3901_v7 = vmul.f32 %v7636_v63, %v7443_v8  ;;  %v3904_v15 = vmul.f32 %v7636_v63, %v7451_v26  ;;  %v3903_v22 = vmul.f32 %v7636_v63, %v7455_v28 }
 0x359   : > { %4424 = vst.msk [vmem:[#allocation2 + $0x19] sm:$0xff] %vm394_vm2, %v4360_v47  ;;  %4425 = vst.msk [vmem:[#allocation2 + $0x21] sm:$0xff] %vm394_vm2, %v4361_v61  ;;  %v3906_v42 = vmul.f32 %v7636_v63, %v7463_v34  ;;  %v3905_v8 = vmul.f32 %v7636_v63, %v7467_v36  ;;  %v3939_v27 = vmul.f32 %v7641_v31, %v3900_v17 }
 0x35a   : > { %4426 = vst.msk [vmem:[#allocation2 + $0x31] sm:$0xff] %vm394_vm2, %v4362_v55  ;;  %4427 = vst.msk [vmem:[#allocation2 + $0x39] sm:$0xff] %vm394_vm2, %v4363_v59  ;;  %v3938_v44 = vmul.f32 %v7641_v31, %v3899_v32  ;;  %v3941_v51 = vmul.f32 %v7641_v31, %v3902_v40  ;;  %v3940_v3 = vmul.f32 %v7641_v31, %v3901_v7 }
 0x35b   : > { %4396 = vst.msk [vmem:[%s6317_s10 + $0x20] sm:$0xff] %vm394_vm2, %v4364_v5  ;;  %4397 = vst.msk [vmem:[%s6317_s10 + $0x28] sm:$0xff] %vm394_vm2, %v4365_v38  ;;  %v3943_v57 = vmul.f32 %v7641_v31, %v3904_v15  ;;  %v3942_v26 = vmul.f32 %v7641_v31, %v3903_v22  ;;  %v3945_v28 = vmul.f32 %v7641_v31, %v3906_v42 }
 0x35c   : > { %4399 = vst.msk [vmem:[%s6317_s10 + $0x38] sm:$0xff] %vm394_vm2, %v4367_v49  ;;  %4428 = vst.msk [vmem:[#allocation2 + $0x49] sm:$0xff] %vm394_vm2, %v4364_v5  ;;  %v3944_v18 = vmul.f32 %v7641_v31, %v3905_v8  ;;  %v3978_v34 = vadd.f32 %v7660_v21, %v3939_v27  ;;  %v3977_v36 = vadd.f32 %v7660_v21, %v3938_v44 }
 0x35d   : > { %4429 = vst.msk [vmem:[#allocation2 + $0x51] sm:$0xff] %vm394_vm2, %v4365_v38  ;;  %4431 = vst.msk [vmem:[#allocation2 + $0x69] sm:$0xff] %vm394_vm2, %v4367_v49  ;;  %v3980_v29 = vadd.f32 %v7660_v21, %v3941_v51  ;;  %v3979_v10 = vadd.f32 %v7660_v21, %v3940_v3  ;;  %v3982_v14 = vadd.f32 %v7660_v21, %v3943_v57 }
 0x35e   : > { %4398 = vst.msk [vmem:[%s6317_s10 + $0x30] sm:$0xff] %vm394_vm2, %v4366_v46  ;;  %4430 = vst.msk [vmem:[#allocation2 + $0x61] sm:$0xff] %vm394_vm2, %v4366_v46  ;;  %v3981_v35 = vadd.f32 %v7660_v21, %v3942_v26  ;;  %v3984_v20 = vadd.f32 %v7660_v21, %v3945_v28  ;;  %v3983_v33 = vadd.f32 %v7660_v21, %v3944_v18 }
 0x35f   : > { %v4247_v9 = vadd.f32 %v7588_v23, %v3978_v34  ;;  %v4242_v24 = vadd.f32 %v7590_v2, %v3977_v36  ;;  %v4257_v47 = vadd.f32 %v7592_v12, %v3980_v29  ;;  %v4252_v61 = vadd.f32 %v7594_v19, %v3979_v10 }
 0x360   : > { %v4267_v55 = vadd.f32 %v7596_v25, %v3982_v14  ;;  %v4262_v59 = vadd.f32 %v7598_v30, %v3981_v35  ;;  %v4277_v5 = vadd.f32 %v7600_v48, %v3984_v20  ;;  %v4272_v38 = vadd.f32 %v7602_v1, %v3983_v33 }
 0x361   : > { %v4369_v49 = vmax.f32 %v4247_v9, 0.0  ;;  %v4368_v23 = vmax.f32 %v4242_v24, 0.0  ;;  %v4371_v46 = vmax.f32 %v4257_v47, 0.0  ;;  %v4370_v17 = vmax.f32 %v4252_v61, 0.0  ;;  %v8071_v47 = vld [vmem:[#allocation33_spill] sm:$0xff] }
 0x362   : > { %v4373_v2 = vmax.f32 %v4267_v55, 0.0  ;;  %v4372_v12 = vmax.f32 %v4262_v59, 0.0  ;;  %v4375_v32 = vmax.f32 %v4277_v5, 0.0  ;;  %v4374_v19 = vmax.f32 %v4272_v38, 0.0  ;;  %v8073_v55 = vld [vmem:[#allocation34_spill] sm:$0xff]  ;;  %v8074_v5 = vld [vmem:[#allocation4_spill] sm:$0xff] }
 0x363   : > { %4401 = vst.msk [vmem:[%s6317_s10 + $0x48] sm:$0xff] %vm394_vm2, %v4369_v49  ;;  %4433 = vst.msk [vmem:[#allocation2 + $0x81] sm:$0xff] %vm394_vm2, %v4369_v49  ;;  %v3908_v25 = vmul.f32 %v7636_v63, %v7475_v4  ;;  %v3907_v30 = vmul.f32 %v7636_v63, %v7479_v6  ;;  %v3910_v48 = vmul.f32 %v7636_v63, %v7487_v16  ;;  %v8075_v49 = vld [vmem:[#allocation5_spill] sm:$0xff] }
 0x364   : > { %4400 = vst.msk [vmem:[%s6317_s10 + $0x40] sm:$0xff] %vm394_vm2, %v4368_v23  ;;  %4432 = vst.msk [vmem:[#allocation2 + $0x79] sm:$0xff] %vm394_vm2, %v4368_v23  ;;  %v3909_v1 = vmul.f32 %v7636_v63, %v7491_v0  ;;  %v3912_v4 = vmul.f32 %v7636_v63, %v7499_v58  ;;  %v3911_v6 = vmul.f32 %v7636_v63, %v7503_v56 }
 0x365   : > { %4403 = vst.msk [vmem:[%s6317_s10 + $0x58] sm:$0xff] %vm394_vm2, %v4371_v46  ;;  %4435 = vst.msk [vmem:[#allocation2 + $0x99] sm:$0xff] %vm394_vm2, %v4371_v46  ;;  %v3914_v16 = vmul.f32 %v7636_v63, %v7511_v50  ;;  %v3913_v0 = vmul.f32 %v7636_v63, %v7515_v45  ;;  %v3947_v40 = vmul.f32 %v7641_v31, %v3908_v25 }
 0x366   : > { %4402 = vst.msk [vmem:[%s6317_s10 + $0x50] sm:$0xff] %vm394_vm2, %v4370_v17  ;;  %4434 = vst.msk [vmem:[#allocation2 + $0x91] sm:$0xff] %vm394_vm2, %v4370_v17  ;;  %v3946_v7 = vmul.f32 %v7641_v31, %v3907_v30  ;;  %v3949_v15 = vmul.f32 %v7641_v31, %v3910_v48  ;;  %v3948_v22 = vmul.f32 %v7641_v31, %v3909_v1 }
 0x367   : > { %4405 = vst.msk [vmem:[%s6317_s10 + $0x68] sm:$0xff] %vm394_vm2, %v4373_v2  ;;  %4437 = vst.msk [vmem:[#allocation2 + $0xb1] sm:$0xff] %vm394_vm2, %v4373_v2  ;;  %v3951_v42 = vmul.f32 %v7641_v31, %v3912_v4  ;;  %v3950_v58 = vmul.f32 %v7641_v31, %v3911_v6  ;;  %v3953_v56 = vmul.f32 %v7641_v31, %v3914_v16 }
 0x368   : > { %4404 = vst.msk [vmem:[%s6317_s10 + $0x60] sm:$0xff] %vm394_vm2, %v4372_v12  ;;  %4436 = vst.msk [vmem:[#allocation2 + $0xa9] sm:$0xff] %vm394_vm2, %v4372_v12  ;;  %v3952_v8 = vmul.f32 %v7641_v31, %v3913_v0  ;;  %v3986_v50 = vadd.f32 %v7660_v21, %v3947_v40  ;;  %v3985_v45 = vadd.f32 %v7660_v21, %v3946_v7  ;;  %v8076_v7 = vld [vmem:[#allocation6_spill] sm:$0xff] }
 0x369   : > { %4407 = vst.msk [vmem:[%s6317_s10 + $0x78] sm:$0xff] %vm394_vm2, %v4375_v32  ;;  %4439 = vst.msk [vmem:[#allocation2 + $0xc9] sm:$0xff] %vm394_vm2, %v4375_v32  ;;  %v3988_v27 = vadd.f32 %v7660_v21, %v3949_v15  ;;  %v3987_v44 = vadd.f32 %v7660_v21, %v3948_v22  ;;  %v3990_v51 = vadd.f32 %v7660_v21, %v3951_v42  ;;  %v8077_v22 = vld [vmem:[#allocation7_spill] sm:$0xff]  ;;  %v8078_v42 = vld [vmem:[#allocation8_spill] sm:$0xff] }
 0x36a   : > { %4406 = vst.msk [vmem:[%s6317_s10 + $0x70] sm:$0xff] %vm394_vm2, %v4374_v19  ;;  %4438 = vst.msk [vmem:[#allocation2 + $0xc1] sm:$0xff] %vm394_vm2, %v4374_v19  ;;  %v3989_v3 = vadd.f32 %v7660_v21, %v3950_v58  ;;  %v3992_v57 = vadd.f32 %v7660_v21, %v3953_v56  ;;  %v3991_v26 = vadd.f32 %v7660_v21, %v3952_v8  ;;  %v8079_v56 = vld [vmem:[#allocation9_spill] sm:$0xff] }
 0x36b   : > { %v4287_v28 = vadd.f32 %v7604_v11, %v3986_v50  ;;  %v4282_v18 = vadd.f32 %v7606_v13, %v3985_v45  ;;  %v4297_v34 = vadd.f32 %v7608_v62, %v3988_v27  ;;  %v4292_v36 = vadd.f32 %v7610_v60, %v3987_v44  ;;  %v8080_v50 = vld [vmem:[#allocation10_spill] sm:$0xff]  ;;  %v8081_v44 = vld [vmem:[#allocation11_spill] sm:$0xff] }
 0x36c   : > { %v4307_v29 = vadd.f32 %v7612_v54, %v3990_v51  ;;  %v4302_v10 = vadd.f32 %v7614_v52, %v3989_v3  ;;  %v4317_v14 = vadd.f32 %v7616_v43, %v3992_v57  ;;  %v4312_v35 = vadd.f32 %v7618_v41, %v3991_v26  ;;  %v8070_v43 = vld [vmem:[#allocation40_spill] sm:$0xff] }
 0x36d   : > { %v4377_v20 = vmax.f32 %v4287_v28, 0.0  ;;  %v4376_v11 = vmax.f32 %v4282_v18, 0.0  ;;  %v4379_v33 = vmax.f32 %v4297_v34, 0.0  ;;  %v4378_v9 = vmax.f32 %v4292_v36, 0.0  ;;  %v8082_v3 = vld [vmem:[#allocation12_spill] sm:$0xff] }
 0x36e   : > { %v4381_v13 = vmax.f32 %v4307_v29, 0.0  ;;  %v4380_v62 = vmax.f32 %v4302_v10, 0.0  ;;  %v4383_v24 = vmax.f32 %v4317_v14, 0.0  ;;  %v4382_v60 = vmax.f32 %v4312_v35, 0.0 }
 0x36f   : > { %4409 = vst.msk [vmem:[%s6317_s10 + $0x88] sm:$0xff] %vm394_vm2, %v4377_v20  ;;  %4441 = vst.msk [vmem:[#allocation2 + $0xe1] sm:$0xff] %vm394_vm2, %v4377_v20  ;;  %v3916_v54 = vmul.f32 %v7636_v63, %v7523_v39  ;;  %v3915_v52 = vmul.f32 %v7636_v63, %v7527_v37  ;;  %v3918_v41 = vmul.f32 %v7636_v63, %v8070_v43  ;;  %v8072_v39 = vld [vmem:[#allocation3_spill] sm:$0xff] }
 0x370   : > { %4408 = vst.msk [vmem:[%s6317_s10 + $0x80] sm:$0xff] %vm394_vm2, %v4376_v11  ;;  %4440 = vst.msk [vmem:[#allocation2 + $0xd9] sm:$0xff] %vm394_vm2, %v4376_v11  ;;  %v3917_v61 = vmul.f32 %v7636_v63, %v8071_v47  ;;  %v3920_v37 = vmul.f32 %v7636_v63, %v8072_v39  ;;  %v3919_v59 = vmul.f32 %v7636_v63, %v8073_v55 }
 0x371   : > { %4411 = vst.msk [vmem:[%s6317_s10 + $0x98] sm:$0xff] %vm394_vm2, %v4379_v33  ;;  %4443 = vst.msk [vmem:[#allocation2 + $0xf9] sm:$0xff] %vm394_vm2, %v4379_v33  ;;  %v3922_v38 = vmul.f32 %v7636_v63, %v8074_v5  ;;  %v3921_v23 = vmul.f32 %v7636_v63, %v8075_v49  ;;  %v3955_v46 = vmul.f32 %v7641_v31, %v3916_v54 }
 0x372   : > { %4410 = vst.msk [vmem:[%s6317_s10 + $0x90] sm:$0xff] %vm394_vm2, %v4378_v9  ;;  %4442 = vst.msk [vmem:[#allocation2 + $0xf1] sm:$0xff] %vm394_vm2, %v4378_v9  ;;  %v3954_v17 = vmul.f32 %v7641_v31, %v3915_v52  ;;  %v3957_v2 = vmul.f32 %v7641_v31, %v3918_v41  ;;  %v3956_v12 = vmul.f32 %v7641_v31, %v3917_v61 }
 0x373   : > { %4413 = vst.msk [vmem:[%s6317_s10 + $0xa8] sm:$0xff] %vm394_vm2, %v4381_v13  ;;  %4445 = vst.msk [vmem:[#allocation2 + $0x111] sm:$0xff] %vm394_vm2, %v4381_v13  ;;  %v3959_v32 = vmul.f32 %v7641_v31, %v3920_v37  ;;  %v3958_v19 = vmul.f32 %v7641_v31, %v3919_v59  ;;  %v3961_v25 = vmul.f32 %v7641_v31, %v3922_v38 }
 0x374   : > { %4412 = vst.msk [vmem:[%s6317_s10 + $0xa0] sm:$0xff] %vm394_vm2, %v4380_v62  ;;  %4444 = vst.msk [vmem:[#allocation2 + $0x109] sm:$0xff] %vm394_vm2, %v4380_v62  ;;  %v3960_v30 = vmul.f32 %v7641_v31, %v3921_v23  ;;  %v3994_v48 = vadd.f32 %v7660_v21, %v3955_v46  ;;  %v3993_v63 = vadd.f32 %v7660_v21, %v3954_v17 }
 0x375   : > { %4415 = vst.msk [vmem:[%s6317_s10 + $0xb8] sm:$0xff] %vm394_vm2, %v4383_v24  ;;  %4447 = vst.msk [vmem:[#allocation2 + $0x129] sm:$0xff] %vm394_vm2, %v4383_v24  ;;  %v3996_v1 = vadd.f32 %v7660_v21, %v3957_v2  ;;  %v3995_v4 = vadd.f32 %v7660_v21, %v3956_v12  ;;  %v3998_v6 = vadd.f32 %v7660_v21, %v3959_v32 }
 0x376   : > { %4414 = vst.msk [vmem:[%s6317_s10 + $0xb0] sm:$0xff] %vm394_vm2, %v4382_v60  ;;  %4446 = vst.msk [vmem:[#allocation2 + $0x121] sm:$0xff] %vm394_vm2, %v4382_v60  ;;  %v3997_v16 = vadd.f32 %v7660_v21, %v3958_v19  ;;  %v4000_v0 = vadd.f32 %v7660_v21, %v3961_v25  ;;  %v3999_v40 = vadd.f32 %v7660_v21, %v3960_v30 }
 0x377   : > { %v4327_v15 = vadd.f32 %v8076_v7, %v3994_v48  ;;  %v4322_v31 = vadd.f32 %v8077_v22, %v3993_v63  ;;  %v4337_v58 = vadd.f32 %v8078_v42, %v3996_v1  ;;  %v4332_v8 = vadd.f32 %v8079_v56, %v3995_v4 }
 0x378   : > { %v4347_v45 = vadd.f32 %v8080_v50, %v3998_v6  ;;  %v4342_v27 = vadd.f32 %v7630_v53, %v3997_v16  ;;  %v4357_v51 = vadd.f32 %v8081_v44, %v4000_v0  ;;  %v4352_v21 = vadd.f32 %v8082_v3, %v3999_v40 }
 0x379   : > { %v4385_v57 = vmax.f32 %v4327_v15, 0.0  ;;  %v4384_v26 = vmax.f32 %v4322_v31, 0.0  ;;  %v4387_v28 = vmax.f32 %v4337_v58, 0.0  ;;  %v4386_v18 = vmax.f32 %v4332_v8, 0.0 }
 0x37a   : > { %v4389_v34 = vmax.f32 %v4347_v45, 0.0  ;;  %v4388_v36 = vmax.f32 %v4342_v27, 0.0  ;;  %v4391_v29 = vmax.f32 %v4357_v51, 0.0  ;;  %v4390_v10 = vmax.f32 %v4352_v21, 0.0 }
 0x37b   : > { %4417 = vst.msk [vmem:[%s6317_s10 + $0xc8] sm:$0xff] %vm394_vm2, %v4385_v57  ;;  %4449 = vst.msk [vmem:[#allocation2 + $0x141] sm:$0xff] %vm394_vm2, %v4385_v57 }
 0x37c   : > { %4416 = vst.msk [vmem:[%s6317_s10 + $0xc0] sm:$0xff] %vm394_vm2, %v4384_v26  ;;  %4448 = vst.msk [vmem:[#allocation2 + $0x139] sm:$0xff] %vm394_vm2, %v4384_v26 }
 0x37d   : > { %4419 = vst.msk [vmem:[%s6317_s10 + $0xd8] sm:$0xff] %vm394_vm2, %v4387_v28  ;;  %4451 = vst.msk [vmem:[#allocation2 + $0x159] sm:$0xff] %vm394_vm2, %v4387_v28 }
 0x37e   : > { %4418 = vst.msk [vmem:[%s6317_s10 + $0xd0] sm:$0xff] %vm394_vm2, %v4386_v18  ;;  %4450 = vst.msk [vmem:[#allocation2 + $0x151] sm:$0xff] %vm394_vm2, %v4386_v18 }
 0x37f   : > { %4421 = vst.msk [vmem:[%s6317_s10 + $0xe8] sm:$0xff] %vm394_vm2, %v4389_v34  ;;  %4453 = vst.msk [vmem:[#allocation2 + $0x171] sm:$0xff] %vm394_vm2, %v4389_v34 }
 0x380   : > { %4420 = vst.msk [vmem:[%s6317_s10 + $0xe0] sm:$0xff] %vm394_vm2, %v4388_v36  ;;  %4452 = vst.msk [vmem:[#allocation2 + $0x169] sm:$0xff] %vm394_vm2, %v4388_v36 }
 0x381   : > { %4423 = vst.msk [vmem:[%s6317_s10 + $0xf8] sm:$0xff] %vm394_vm2, %v4391_v29  ;;  %4455 = vst.msk [vmem:[#allocation2 + $0x189] sm:$0xff] %vm394_vm2, %v4391_v29 }
 0x382   : > { %4422 = vst.msk [vmem:[%s6317_s10 + $0xf0] sm:$0xff] %vm394_vm2, %v4390_v10  ;;  %4454 = vst.msk [vmem:[#allocation2 + $0x181] sm:$0xff] %vm394_vm2, %v4390_v10 }
 0x383 PF: > { %s15_s22 = sadd.s32 1, %s6246_s22   ;;  %s8083_s18 = smov %s6238_s20 }
 0x384   : > { %p12_p8 = scmp.ge.s32.totalorder %s15_s22, 18   ;;  %s8084_s19 = smov %s6242_s21 }
 0x385   : > { %s8085_s20 = smov %s8088_s23  ;;  %s8086_s21 = smov %s8092_s24 }
 0x386   :  { %14 = sbr.rel (!%p12_p8) target bundleno = 3 (0x3), region = 84 }

</bundles_post_ra>
